<compile_context>
chip_gen: v7x
topology: tpu7x:2x2x1
jax: 0.10.0
libtpu: 0.0.40
codegen_flags: <defaults>
</compile_context>

<pallas_src>
import functools

import jax
import jax.numpy as jnp
from jax.experimental import pallas as pl
from jax.experimental.pallas import tpu as pltpu


def _lstm_kernel(x_ref, wih0_ref, wtop_ref, whh1_ref, b0_ref, b1_ref,
                 wlin_ref, blin_ref, out_ref, *, B, T):
    """Single-invocation 2-layer LSTM + Linear head (eval mode).

    x_ref    : (T*B, D)  time-major flattened input, bf16 (row = t*B + b)
    wih0_ref : (D, 4H)   layer-0 input weights, bf16 (pre-transposed)
    wtop_ref : (H, 8H)   fused [whh0 | wih1], bf16
    whh1_ref : (H, 4H)   layer-1 recurrent weights, bf16
    b0_ref   : (1, 4H)   layer-0 bias (b_ih + b_hh), f32
    b1_ref   : (1, 4H)   layer-1 bias (b_ih + b_hh), f32
    wlin_ref : (1, H)    output linear weight (row vector), f32
    blin_ref : (1, 1)    output linear bias, f32
    out_ref  : (B, 1)    f32
    """
    H = whh1_ref.shape[0]
    G = 4 * H

    # ---- prologue: non-recurrent layer-0 projection for all timesteps at once.
    # One (T*B, D) x (D, 4H) bf16 MXU matmul, f32 accumulate, bias folded in.
    xw = jnp.dot(x_ref[...], wih0_ref[...],
                 preferred_element_type=jnp.float32) + b0_ref[...]   # (T*B, 4H) f32

    wtop = wtop_ref[...]                                   # (H, 8H) bf16
    whh1 = whh1_ref[...]                                   # (H, 4H) bf16
    b1b = jnp.broadcast_to(b1_ref[...], (B, G))            # hoisted broadcast, f32

    def gates_to_state(gates, c_prev):
        # Whole-tensor transcendentals (2 EUP passes over (B, 4H)),
        # then static per-gate lane slices.  PyTorch gate order: i, f, g, o.
        sg = jax.nn.sigmoid(gates)
        th = jnp.tanh(gates)
        i_g = sg[:, 0 * H:1 * H]
        f_g = sg[:, 1 * H:2 * H]
        g_g = th[:, 2 * H:3 * H]
        o_g = sg[:, 3 * H:4 * H]
        c_new = i_g * g_g if c_prev is None else f_g * c_prev + i_g * g_g
        h_new = o_g * jnp.tanh(c_new)
        return h_new, c_new

    # ---- t = 0: all initial states are zero -> skip the zero recurrent matmuls.
    g0 = xw[0:B, :]                                        # no h0 @ whh0
    h0, c0 = gates_to_state(g0, None)
    big = jnp.dot(h0.astype(jnp.bfloat16), wtop,
                  preferred_element_type=jnp.float32)      # (B, 8H) f32
    rec0 = big[:, :G]                                      # h0(0) @ whh0, used at t=1
    g1 = big[:, G:] + b1b                                  # no h1 @ whh1 (h1(-1) = 0)
    h1, c1 = gates_to_state(g1, None)
    g1rec = None
    if T > 1:
        g1rec = jnp.dot(h1.astype(jnp.bfloat16), whh1,
                        preferred_element_type=jnp.float32)  # off the critical path

    # ---- t = 1 .. T-1: fully-unrolled (T is a small static constant). ----------
    for t in range(1, T):
        # layer 0: recurrent term came out of the previous fused matmul.
        g0 = xw[t * B:(t + 1) * B, :] + rec0               # static sublane slice
        h0, c0 = gates_to_state(g0, c0)

        # Inter-layer LSTM dropout is identity in eval mode.
        # fused matmul: lanes [0:4H] -> layer-0 recurrent for t+1,
        #               lanes [4H:8H] -> layer-1 input contribution for t.
        big = jnp.dot(h0.astype(jnp.bfloat16), wtop,
                      preferred_element_type=jnp.float32)
        rec0 = big[:, :G]
        g1 = big[:, G:] + g1rec + b1b
        h1, c1 = gates_to_state(g1, c1)

        if t + 1 < T:
            g1rec = jnp.dot(h1.astype(jnp.bfloat16), whh1,
                            preferred_element_type=jnp.float32)

    # TODO(synk): training-mode dropout (PRNG Bernoulli masks) not implemented;
    # eval-mode dropout is the identity.

    # ---- final Linear(H -> 1): VPU multiply + cross-lane reduce. ----------------
    out = jnp.sum(h1 * wlin_ref[...], axis=1, keepdims=True) + blin_ref[...]
    out_ref[...] = out.astype(out_ref.dtype)


def lstm_predict(x, params):
    """x: (B, T, D) float32.  Returns (B, 1) float32."""
    B, T, D = x.shape
    # Pad batch up to a full sublane group (multiple of 8): full vregs, and the
    # time-major per-step slice becomes exactly sublane-aligned.
    B_pad = max(8, ((B + 7) // 8) * 8)
    if B_pad != B:
        x = jnp.pad(x, ((0, B_pad - B), (0, 0), (0, 0)))

    # Time-major layout: per-step slice of the projected input is contiguous.
    # The transpose is on a tiny tensor, outside the kernel, off the hot path.
    x_tm = jnp.transpose(x, (1, 0, 2)).reshape(T * B_pad, D).astype(jnp.bfloat16)

    kernel = functools.partial(_lstm_kernel, B=B_pad, T=T)
    vmem = lambda: pl.BlockSpec(memory_space=pltpu.MemorySpace.VMEM)
    out = pl.pallas_call(
        kernel,
        out_shape=jax.ShapeDtypeStruct((B_pad, 1), jnp.float32),
        in_specs=[vmem() for _ in range(8)],
        out_specs=vmem(),
        # No grid: single invocation, everything resident in VMEM (<100 KiB).
    )(x_tm,
      params["wih0"], params["wtop"], params["whh1"],
      params["b0"], params["b1"],
      params["wlin"], params["blin"])
    return out[:B]


def init_params(key, input_dim, hidden_dim):
    """Deterministic PyTorch-style uniform(-1/sqrt(H), 1/sqrt(H)) init.
       Matmul weights stored pre-transposed as (in, 4H) and in bf16; the layer-0
       recurrent and layer-1 input weights are fused along lanes into
       wtop = [whh0 | wih1] of shape (H, 8H); biases folded as b_ih + b_hh (f32)."""
    H = hidden_dim
    k = 1.0 / jnp.sqrt(jnp.float32(H))
    keys = jax.random.split(key, 10)
    u = lambda kk, shape: jax.random.uniform(kk, shape, jnp.float32, -k, k)
    wih0 = u(keys[0], (input_dim, 4 * H))
    whh0 = u(keys[1], (H, 4 * H))
    wih1 = u(keys[4], (H, 4 * H))
    whh1 = u(keys[5], (H, 4 * H))
    return {
        "wih0": wih0.astype(jnp.bfloat16),
        "wtop": jnp.concatenate([whh0, wih1], axis=1).astype(jnp.bfloat16),  # (H, 8H)
        "whh1": whh1.astype(jnp.bfloat16),
        "b0":   u(keys[2], (1, 4 * H)) + u(keys[3], (1, 4 * H)),
        "b1":   u(keys[6], (1, 4 * H)) + u(keys[7], (1, 4 * H)),
        "wlin": u(keys[8], (1, H)),
        "blin": u(keys[9], (1, 1)),
    }


def reference_predict(x, params):
    """Pure-JAX reference of the same forward pass (eval mode), mirroring the
       kernel's precision scheme (bf16 matmul inputs, f32 accumulate/elementwise)."""
    B, T, D = x.shape
    H = params["whh1"].shape[0]
    G = 4 * H
    wih0 = params["wih0"]
    whh0 = params["wtop"][:, :G]
    wih1 = params["wtop"][:, G:]
    whh1 = params["whh1"]

    def dot_bf16(a, w):
        return jnp.dot(a.astype(jnp.bfloat16), w, preferred_element_type=jnp.float32)

    def cell(inp, h, c, wih, whh, b):
        gates = dot_bf16(inp, wih) + dot_bf16(h, whh) + b
        i = jax.nn.sigmoid(gates[:, 0 * H:1 * H])
        f = jax.nn.sigmoid(gates[:, 1 * H:2 * H])
        g = jnp.tanh(gates[:, 2 * H:3 * H])
        o = jax.nn.sigmoid(gates[:, 3 * H:4 * H])
        c_new = f * c + i * g
        return o * jnp.tanh(c_new), c_new

    h0 = jnp.zeros((B, H), jnp.float32)
    c0 = jnp.zeros((B, H), jnp.float32)
    h1 = jnp.zeros((B, H), jnp.float32)
    c1 = jnp.zeros((B, H), jnp.float32)
    for t in range(T):
        h0, c0 = cell(x[:, t, :], h0, c0, wih0, whh0, params["b0"])
        h1, c1 = cell(h0, h1, c1, wih1, whh1, params["b1"])
    return h1 @ params["wlin"].T + params["blin"]


if __name__ == "__main__":
    B, T, D, H = 4, 8, 8, 32   # batch, seq_length, input_dim, hidden_dim

    key = jax.random.PRNGKey(0)
    kx, kp = jax.random.split(key)
    x = jax.random.normal(kx, (B, T, D), dtype=jnp.float32)
    params = init_params(kp, D, H)

    out = lstm_predict(x, params)
    out = jax.block_until_ready(out)

    ref = reference_predict(x, params)
    assert out.shape == (B, 1)
    assert jnp.allclose(out, ref, atol=2e-3, rtol=2e-3), (out, ref)

    print("KERNEL_OK")
</pallas_src>

<mosaic_0001>
module attributes {stable_mosaic.version = 11 : i64} {
  func.func @_lstm_kernel(%arg0: memref<64x8xbf16, #tpu.memory_space<vmem>>, %arg1: memref<8x128xbf16, #tpu.memory_space<vmem>>, %arg2: memref<32x256xbf16, #tpu.memory_space<vmem>>, %arg3: memref<32x128xbf16, #tpu.memory_space<vmem>>, %arg4: memref<1x128xf32, #tpu.memory_space<vmem>>, %arg5: memref<1x128xf32, #tpu.memory_space<vmem>>, %arg6: memref<1x32xf32, #tpu.memory_space<vmem>>, %arg7: memref<1x1xf32, #tpu.memory_space<vmem>>, %arg8: memref<8x1xf32, #tpu.memory_space<vmem>>) attributes {dimension_semantics = [], scalar_prefetch = 0 : i64, scratch_operands = 0 : i64, tpu.core_type = #tpu.core_type<tc>} {
    %c0 = arith.constant 0 : index
    %c0_0 = arith.constant 0 : index
    %0 = vector.load %arg0[%c0, %c0_0] : memref<64x8xbf16, #tpu.memory_space<vmem>>, vector<64x8xbf16>
    %c0_1 = arith.constant 0 : index
    %c0_2 = arith.constant 0 : index
    %1 = vector.load %arg1[%c0_1, %c0_2] : memref<8x128xbf16, #tpu.memory_space<vmem>>, vector<8x128xbf16>
    %cst = arith.constant dense<0.000000e+00> : vector<64x128xf32>
    %2 = tpu.matmul %0, %1, %cst {dimension_numbers = #tpu.dot_dimension_numbers<[1], [0], [0], [1], [0, 0, 1, 1], [], []>} : vector<64x8xbf16>, vector<8x128xbf16>, vector<64x128xf32> -> vector<64x128xf32>
    %c0_3 = arith.constant 0 : index
    %c0_4 = arith.constant 0 : index
    %3 = vector.load %arg4[%c0_3, %c0_4] : memref<1x128xf32, #tpu.memory_space<vmem>>, vector<1x128xf32>
    %4 = vector.broadcast %3 : vector<1x128xf32> to vector<64x128xf32>
    %5 = arith.addf %2, %4 : vector<64x128xf32>
    %c0_5 = arith.constant 0 : index
    %c0_6 = arith.constant 0 : index
    %6 = vector.load %arg2[%c0_5, %c0_6] : memref<32x256xbf16, #tpu.memory_space<vmem>>, vector<32x256xbf16>
    %c0_7 = arith.constant 0 : index
    %c0_8 = arith.constant 0 : index
    %7 = vector.load %arg3[%c0_7, %c0_8] : memref<32x128xbf16, #tpu.memory_space<vmem>>, vector<32x128xbf16>
    %c0_9 = arith.constant 0 : index
    %c0_10 = arith.constant 0 : index
    %8 = vector.load %arg5[%c0_9, %c0_10] : memref<1x128xf32, #tpu.memory_space<vmem>>, vector<1x128xf32>
    %9 = vector.shape_cast %8 : vector<1x128xf32> to vector<1x128xf32>
    %10 = vector.broadcast %9 : vector<1x128xf32> to vector<8x128xf32>
    %11 = vector.extract_strided_slice %5 {offsets = [0, 0], sizes = [8, 128], strides = [1, 1]} : vector<64x128xf32> to vector<8x128xf32>
    %12 = arith.negf %11 : vector<8x128xf32>
    %13 = math.exp %12 : vector<8x128xf32>
    %cst_11 = arith.constant 1.000000e+00 : f32
    %14 = vector.broadcast %cst_11 : f32 to vector<8x128xf32>
    %15 = arith.addf %14, %13 : vector<8x128xf32>
    %16 = arith.divf %14, %15 : vector<8x128xf32>
    %17 = math.tanh %11 : vector<8x128xf32>
    %18 = vector.extract_strided_slice %16 {offsets = [0, 0], sizes = [8, 32], strides = [1, 1]} : vector<8x128xf32> to vector<8x32xf32>
    %19 = vector.extract_strided_slice %17 {offsets = [0, 64], sizes = [8, 32], strides = [1, 1]} : vector<8x128xf32> to vector<8x32xf32>
    %20 = vector.extract_strided_slice %16 {offsets = [0, 96], sizes = [8, 32], strides = [1, 1]} : vector<8x128xf32> to vector<8x32xf32>
    %21 = arith.mulf %18, %19 : vector<8x32xf32>
    %22 = math.tanh %21 : vector<8x32xf32>
    %23 = arith.mulf %20, %22 : vector<8x32xf32>
    %24 = arith.truncf %23 : vector<8x32xf32> to vector<8x32xbf16>
    %cst_12 = arith.constant dense<0.000000e+00> : vector<8x256xf32>
    %25 = tpu.matmul %24, %6, %cst_12 {dimension_numbers = #tpu.dot_dimension_numbers<[1], [0], [0], [1], [0, 0, 1, 1], [], []>} : vector<8x32xbf16>, vector<32x256xbf16>, vector<8x256xf32> -> vector<8x256xf32>
    %26 = vector.extract_strided_slice %25 {offsets = [0, 0], sizes = [8, 128], strides = [1, 1]} : vector<8x256xf32> to vector<8x128xf32>
    %27 = vector.extract_strided_slice %25 {offsets = [0, 128], sizes = [8, 128], strides = [1, 1]} : vector<8x256xf32> to vector<8x128xf32>
    %28 = arith.addf %27, %10 : vector<8x128xf32>
    %29 = arith.negf %28 : vector<8x128xf32>
    %30 = math.exp %29 : vector<8x128xf32>
    %cst_13 = arith.constant 1.000000e+00 : f32
    %31 = vector.broadcast %cst_13 : f32 to vector<8x128xf32>
    %32 = arith.addf %31, %30 : vector<8x128xf32>
    %33 = arith.divf %31, %32 : vector<8x128xf32>
    %34 = math.tanh %28 : vector<8x128xf32>
    %35 = vector.extract_strided_slice %33 {offsets = [0, 0], sizes = [8, 32], strides = [1, 1]} : vector<8x128xf32> to vector<8x32xf32>
    %36 = vector.extract_strided_slice %34 {offsets = [0, 64], sizes = [8, 32], strides = [1, 1]} : vector<8x128xf32> to vector<8x32xf32>
    %37 = vector.extract_strided_slice %33 {offsets = [0, 96], sizes = [8, 32], strides = [1, 1]} : vector<8x128xf32> to vector<8x32xf32>
    %38 = arith.mulf %35, %36 : vector<8x32xf32>
    %39 = math.tanh %38 : vector<8x32xf32>
    %40 = arith.mulf %37, %39 : vector<8x32xf32>
    %41 = arith.truncf %40 : vector<8x32xf32> to vector<8x32xbf16>
    %cst_14 = arith.constant dense<0.000000e+00> : vector<8x128xf32>
    %42 = tpu.matmul %41, %7, %cst_14 {dimension_numbers = #tpu.dot_dimension_numbers<[1], [0], [0], [1], [0, 0, 1, 1], [], []>} : vector<8x32xbf16>, vector<32x128xbf16>, vector<8x128xf32> -> vector<8x128xf32>
    %43 = vector.extract_strided_slice %5 {offsets = [8, 0], sizes = [8, 128], strides = [1, 1]} : vector<64x128xf32> to vector<8x128xf32>
    %44 = arith.addf %43, %26 : vector<8x128xf32>
    %45 = arith.negf %44 : vector<8x128xf32>
    %46 = math.exp %45 : vector<8x128xf32>
    %cst_15 = arith.constant 1.000000e+00 : f32
    %47 = vector.broadcast %cst_15 : f32 to vector<8x128xf32>
    %48 = arith.addf %47, %46 : vector<8x128xf32>
    %49 = arith.divf %47, %48 : vector<8x128xf32>
    %50 = math.tanh %44 : vector<8x128xf32>
    %51 = vector.extract_strided_slice %49 {offsets = [0, 0], sizes = [8, 32], strides = [1, 1]} : vector<8x128xf32> to vector<8x32xf32>
    %52 = vector.extract_strided_slice %49 {offsets = [0, 32], sizes = [8, 32], strides = [1, 1]} : vector<8x128xf32> to vector<8x32xf32>
    %53 = vector.extract_strided_slice %50 {offsets = [0, 64], sizes = [8, 32], strides = [1, 1]} : vector<8x128xf32> to vector<8x32xf32>
    %54 = vector.extract_strided_slice %49 {offsets = [0, 96], sizes = [8, 32], strides = [1, 1]} : vector<8x128xf32> to vector<8x32xf32>
    %55 = arith.mulf %52, %21 : vector<8x32xf32>
    %56 = arith.mulf %51, %53 : vector<8x32xf32>
    %57 = arith.addf %55, %56 : vector<8x32xf32>
    %58 = math.tanh %57 : vector<8x32xf32>
    %59 = arith.mulf %54, %58 : vector<8x32xf32>
    %60 = arith.truncf %59 : vector<8x32xf32> to vector<8x32xbf16>
    %cst_16 = arith.constant dense<0.000000e+00> : vector<8x256xf32>
    %61 = tpu.matmul %60, %6, %cst_16 {dimension_numbers = #tpu.dot_dimension_numbers<[1], [0], [0], [1], [0, 0, 1, 1], [], []>} : vector<8x32xbf16>, vector<32x256xbf16>, vector<8x256xf32> -> vector<8x256xf32>
    %62 = vector.extract_strided_slice %61 {offsets = [0, 0], sizes = [8, 128], strides = [1, 1]} : vector<8x256xf32> to vector<8x128xf32>
    %63 = vector.extract_strided_slice %61 {offsets = [0, 128], sizes = [8, 128], strides = [1, 1]} : vector<8x256xf32> to vector<8x128xf32>
    %64 = arith.addf %63, %42 : vector<8x128xf32>
    %65 = arith.addf %64, %10 : vector<8x128xf32>
    %66 = arith.negf %65 : vector<8x128xf32>
    %67 = math.exp %66 : vector<8x128xf32>
    %cst_17 = arith.constant 1.000000e+00 : f32
    %68 = vector.broadcast %cst_17 : f32 to vector<8x128xf32>
    %69 = arith.addf %68, %67 : vector<8x128xf32>
    %70 = arith.divf %68, %69 : vector<8x128xf32>
    %71 = math.tanh %65 : vector<8x128xf32>
    %72 = vector.extract_strided_slice %70 {offsets = [0, 0], sizes = [8, 32], strides = [1, 1]} : vector<8x128xf32> to vector<8x32xf32>
    %73 = vector.extract_strided_slice %70 {offsets = [0, 32], sizes = [8, 32], strides = [1, 1]} : vector<8x128xf32> to vector<8x32xf32>
    %74 = vector.extract_strided_slice %71 {offsets = [0, 64], sizes = [8, 32], strides = [1, 1]} : vector<8x128xf32> to vector<8x32xf32>
    %75 = vector.extract_strided_slice %70 {offsets = [0, 96], sizes = [8, 32], strides = [1, 1]} : vector<8x128xf32> to vector<8x32xf32>
    %76 = arith.mulf %73, %38 : vector<8x32xf32>
    %77 = arith.mulf %72, %74 : vector<8x32xf32>
    %78 = arith.addf %76, %77 : vector<8x32xf32>
    %79 = math.tanh %78 : vector<8x32xf32>
    %80 = arith.mulf %75, %79 : vector<8x32xf32>
    %81 = arith.truncf %80 : vector<8x32xf32> to vector<8x32xbf16>
    %cst_18 = arith.constant dense<0.000000e+00> : vector<8x128xf32>
    %82 = tpu.matmul %81, %7, %cst_18 {dimension_numbers = #tpu.dot_dimension_numbers<[1], [0], [0], [1], [0, 0, 1, 1], [], []>} : vector<8x32xbf16>, vector<32x128xbf16>, vector<8x128xf32> -> vector<8x128xf32>
    %83 = vector.extract_strided_slice %5 {offsets = [16, 0], sizes = [8, 128], strides = [1, 1]} : vector<64x128xf32> to vector<8x128xf32>
    %84 = arith.addf %83, %62 : vector<8x128xf32>
    %85 = arith.negf %84 : vector<8x128xf32>
    %86 = math.exp %85 : vector<8x128xf32>
    %cst_19 = arith.constant 1.000000e+00 : f32
    %87 = vector.broadcast %cst_19 : f32 to vector<8x128xf32>
    %88 = arith.addf %87, %86 : vector<8x128xf32>
    %89 = arith.divf %87, %88 : vector<8x128xf32>
    %90 = math.tanh %84 : vector<8x128xf32>
    %91 = vector.extract_strided_slice %89 {offsets = [0, 0], sizes = [8, 32], strides = [1, 1]} : vector<8x128xf32> to vector<8x32xf32>
    %92 = vector.extract_strided_slice %89 {offsets = [0, 32], sizes = [8, 32], strides = [1, 1]} : vector<8x128xf32> to vector<8x32xf32>
    %93 = vector.extract_strided_slice %90 {offsets = [0, 64], sizes = [8, 32], strides = [1, 1]} : vector<8x128xf32> to vector<8x32xf32>
    %94 = vector.extract_strided_slice %89 {offsets = [0, 96], sizes = [8, 32], strides = [1, 1]} : vector<8x128xf32> to vector<8x32xf32>
    %95 = arith.mulf %92, %57 : vector<8x32xf32>
    %96 = arith.mulf %91, %93 : vector<8x32xf32>
    %97 = arith.addf %95, %96 : vector<8x32xf32>
    %98 = math.tanh %97 : vector<8x32xf32>
    %99 = arith.mulf %94, %98 : vector<8x32xf32>
    %100 = arith.truncf %99 : vector<8x32xf32> to vector<8x32xbf16>
    %cst_20 = arith.constant dense<0.000000e+00> : vector<8x256xf32>
    %101 = tpu.matmul %100, %6, %cst_20 {dimension_numbers = #tpu.dot_dimension_numbers<[1], [0], [0], [1], [0, 0, 1, 1], [], []>} : vector<8x32xbf16>, vector<32x256xbf16>, vector<8x256xf32> -> vector<8x256xf32>
    %102 = vector.extract_strided_slice %101 {offsets = [0, 0], sizes = [8, 128], strides = [1, 1]} : vector<8x256xf32> to vector<8x128xf32>
    %103 = vector.extract_strided_slice %101 {offsets = [0, 128], sizes = [8, 128], strides = [1, 1]} : vector<8x256xf32> to vector<8x128xf32>
    %104 = arith.addf %103, %82 : vector<8x128xf32>
    %105 = arith.addf %104, %10 : vector<8x128xf32>
    %106 = arith.negf %105 : vector<8x128xf32>
    %107 = math.exp %106 : vector<8x128xf32>
    %cst_21 = arith.constant 1.000000e+00 : f32
    %108 = vector.broadcast %cst_21 : f32 to vector<8x128xf32>
    %109 = arith.addf %108, %107 : vector<8x128xf32>
    %110 = arith.divf %108, %109 : vector<8x128xf32>
    %111 = math.tanh %105 : vector<8x128xf32>
    %112 = vector.extract_strided_slice %110 {offsets = [0, 0], sizes = [8, 32], strides = [1, 1]} : vector<8x128xf32> to vector<8x32xf32>
    %113 = vector.extract_strided_slice %110 {offsets = [0, 32], sizes = [8, 32], strides = [1, 1]} : vector<8x128xf32> to vector<8x32xf32>
    %114 = vector.extract_strided_slice %111 {offsets = [0, 64], sizes = [8, 32], strides = [1, 1]} : vector<8x128xf32> to vector<8x32xf32>
    %115 = vector.extract_strided_slice %110 {offsets = [0, 96], sizes = [8, 32], strides = [1, 1]} : vector<8x128xf32> to vector<8x32xf32>
    %116 = arith.mulf %113, %78 : vector<8x32xf32>
    %117 = arith.mulf %112, %114 : vector<8x32xf32>
    %118 = arith.addf %116, %117 : vector<8x32xf32>
    %119 = math.tanh %118 : vector<8x32xf32>
    %120 = arith.mulf %115, %119 : vector<8x32xf32>
    %121 = arith.truncf %120 : vector<8x32xf32> to vector<8x32xbf16>
    %cst_22 = arith.constant dense<0.000000e+00> : vector<8x128xf32>
    %122 = tpu.matmul %121, %7, %cst_22 {dimension_numbers = #tpu.dot_dimension_numbers<[1], [0], [0], [1], [0, 0, 1, 1], [], []>} : vector<8x32xbf16>, vector<32x128xbf16>, vector<8x128xf32> -> vector<8x128xf32>
    %123 = vector.extract_strided_slice %5 {offsets = [24, 0], sizes = [8, 128], strides = [1, 1]} : vector<64x128xf32> to vector<8x128xf32>
    %124 = arith.addf %123, %102 : vector<8x128xf32>
    %125 = arith.negf %124 : vector<8x128xf32>
    %126 = math.exp %125 : vector<8x128xf32>
    %cst_23 = arith.constant 1.000000e+00 : f32
    %127 = vector.broadcast %cst_23 : f32 to vector<8x128xf32>
    %128 = arith.addf %127, %126 : vector<8x128xf32>
    %129 = arith.divf %127, %128 : vector<8x128xf32>
    %130 = math.tanh %124 : vector<8x128xf32>
    %131 = vector.extract_strided_slice %129 {offsets = [0, 0], sizes = [8, 32], strides = [1, 1]} : vector<8x128xf32> to vector<8x32xf32>
    %132 = vector.extract_strided_slice %129 {offsets = [0, 32], sizes = [8, 32], strides = [1, 1]} : vector<8x128xf32> to vector<8x32xf32>
    %133 = vector.extract_strided_slice %130 {offsets = [0, 64], sizes = [8, 32], strides = [1, 1]} : vector<8x128xf32> to vector<8x32xf32>
    %134 = vector.extract_strided_slice %129 {offsets = [0, 96], sizes = [8, 32], strides = [1, 1]} : vector<8x128xf32> to vector<8x32xf32>
    %135 = arith.mulf %132, %97 : vector<8x32xf32>
    %136 = arith.mulf %131, %133 : vector<8x32xf32>
    %137 = arith.addf %135, %136 : vector<8x32xf32>
    %138 = math.tanh %137 : vector<8x32xf32>
    %139 = arith.mulf %134, %138 : vector<8x32xf32>
    %140 = arith.truncf %139 : vector<8x32xf32> to vector<8x32xbf16>
    %cst_24 = arith.constant dense<0.000000e+00> : vector<8x256xf32>
    %141 = tpu.matmul %140, %6, %cst_24 {dimension_numbers = #tpu.dot_dimension_numbers<[1], [0], [0], [1], [0, 0, 1, 1], [], []>} : vector<8x32xbf16>, vector<32x256xbf16>, vector<8x256xf32> -> vector<8x256xf32>
    %142 = vector.extract_strided_slice %141 {offsets = [0, 0], sizes = [8, 128], strides = [1, 1]} : vector<8x256xf32> to vector<8x128xf32>
    %143 = vector.extract_strided_slice %141 {offsets = [0, 128], sizes = [8, 128], strides = [1, 1]} : vector<8x256xf32> to vector<8x128xf32>
    %144 = arith.addf %143, %122 : vector<8x128xf32>
    %145 = arith.addf %144, %10 : vector<8x128xf32>
    %146 = arith.negf %145 : vector<8x128xf32>
    %147 = math.exp %146 : vector<8x128xf32>
    %cst_25 = arith.constant 1.000000e+00 : f32
    %148 = vector.broadcast %cst_25 : f32 to vector<8x128xf32>
    %149 = arith.addf %148, %147 : vector<8x128xf32>
    %150 = arith.divf %148, %149 : vector<8x128xf32>
    %151 = math.tanh %145 : vector<8x128xf32>
    %152 = vector.extract_strided_slice %150 {offsets = [0, 0], sizes = [8, 32], strides = [1, 1]} : vector<8x128xf32> to vector<8x32xf32>
    %153 = vector.extract_strided_slice %150 {offsets = [0, 32], sizes = [8, 32], strides = [1, 1]} : vector<8x128xf32> to vector<8x32xf32>
    %154 = vector.extract_strided_slice %151 {offsets = [0, 64], sizes = [8, 32], strides = [1, 1]} : vector<8x128xf32> to vector<8x32xf32>
    %155 = vector.extract_strided_slice %150 {offsets = [0, 96], sizes = [8, 32], strides = [1, 1]} : vector<8x128xf32> to vector<8x32xf32>
    %156 = arith.mulf %153, %118 : vector<8x32xf32>
    %157 = arith.mulf %152, %154 : vector<8x32xf32>
    %158 = arith.addf %156, %157 : vector<8x32xf32>
    %159 = math.tanh %158 : vector<8x32xf32>
    %160 = arith.mulf %155, %159 : vector<8x32xf32>
    %161 = arith.truncf %160 : vector<8x32xf32> to vector<8x32xbf16>
    %cst_26 = arith.constant dense<0.000000e+00> : vector<8x128xf32>
    %162 = tpu.matmul %161, %7, %cst_26 {dimension_numbers = #tpu.dot_dimension_numbers<[1], [0], [0], [1], [0, 0, 1, 1], [], []>} : vector<8x32xbf16>, vector<32x128xbf16>, vector<8x128xf32> -> vector<8x128xf32>
    %163 = vector.extract_strided_slice %5 {offsets = [32, 0], sizes = [8, 128], strides = [1, 1]} : vector<64x128xf32> to vector<8x128xf32>
    %164 = arith.addf %163, %142 : vector<8x128xf32>
    %165 = arith.negf %164 : vector<8x128xf32>
    %166 = math.exp %165 : vector<8x128xf32>
    %cst_27 = arith.constant 1.000000e+00 : f32
    %167 = vector.broadcast %cst_27 : f32 to vector<8x128xf32>
    %168 = arith.addf %167, %166 : vector<8x128xf32>
    %169 = arith.divf %167, %168 : vector<8x128xf32>
    %170 = math.tanh %164 : vector<8x128xf32>
    %171 = vector.extract_strided_slice %169 {offsets = [0, 0], sizes = [8, 32], strides = [1, 1]} : vector<8x128xf32> to vector<8x32xf32>
    %172 = vector.extract_strided_slice %169 {offsets = [0, 32], sizes = [8, 32], strides = [1, 1]} : vector<8x128xf32> to vector<8x32xf32>
    %173 = vector.extract_strided_slice %170 {offsets = [0, 64], sizes = [8, 32], strides = [1, 1]} : vector<8x128xf32> to vector<8x32xf32>
    %174 = vector.extract_strided_slice %169 {offsets = [0, 96], sizes = [8, 32], strides = [1, 1]} : vector<8x128xf32> to vector<8x32xf32>
    %175 = arith.mulf %172, %137 : vector<8x32xf32>
    %176 = arith.mulf %171, %173 : vector<8x32xf32>
    %177 = arith.addf %175, %176 : vector<8x32xf32>
    %178 = math.tanh %177 : vector<8x32xf32>
    %179 = arith.mulf %174, %178 : vector<8x32xf32>
    %180 = arith.truncf %179 : vector<8x32xf32> to vector<8x32xbf16>
    %cst_28 = arith.constant dense<0.000000e+00> : vector<8x256xf32>
    %181 = tpu.matmul %180, %6, %cst_28 {dimension_numbers = #tpu.dot_dimension_numbers<[1], [0], [0], [1], [0, 0, 1, 1], [], []>} : vector<8x32xbf16>, vector<32x256xbf16>, vector<8x256xf32> -> vector<8x256xf32>
    %182 = vector.extract_strided_slice %181 {offsets = [0, 0], sizes = [8, 128], strides = [1, 1]} : vector<8x256xf32> to vector<8x128xf32>
    %183 = vector.extract_strided_slice %181 {offsets = [0, 128], sizes = [8, 128], strides = [1, 1]} : vector<8x256xf32> to vector<8x128xf32>
    %184 = arith.addf %183, %162 : vector<8x128xf32>
    %185 = arith.addf %184, %10 : vector<8x128xf32>
    %186 = arith.negf %185 : vector<8x128xf32>
    %187 = math.exp %186 : vector<8x128xf32>
    %cst_29 = arith.constant 1.000000e+00 : f32
    %188 = vector.broadcast %cst_29 : f32 to vector<8x128xf32>
    %189 = arith.addf %188, %187 : vector<8x128xf32>
    %190 = arith.divf %188, %189 : vector<8x128xf32>
    %191 = math.tanh %185 : vector<8x128xf32>
    %192 = vector.extract_strided_slice %190 {offsets = [0, 0], sizes = [8, 32], strides = [1, 1]} : vector<8x128xf32> to vector<8x32xf32>
    %193 = vector.extract_strided_slice %190 {offsets = [0, 32], sizes = [8, 32], strides = [1, 1]} : vector<8x128xf32> to vector<8x32xf32>
    %194 = vector.extract_strided_slice %191 {offsets = [0, 64], sizes = [8, 32], strides = [1, 1]} : vector<8x128xf32> to vector<8x32xf32>
    %195 = vector.extract_strided_slice %190 {offsets = [0, 96], sizes = [8, 32], strides = [1, 1]} : vector<8x128xf32> to vector<8x32xf32>
    %196 = arith.mulf %193, %158 : vector<8x32xf32>
    %197 = arith.mulf %192, %194 : vector<8x32xf32>
    %198 = arith.addf %196, %197 : vector<8x32xf32>
    %199 = math.tanh %198 : vector<8x32xf32>
    %200 = arith.mulf %195, %199 : vector<8x32xf32>
    %201 = arith.truncf %200 : vector<8x32xf32> to vector<8x32xbf16>
    %cst_30 = arith.constant dense<0.000000e+00> : vector<8x128xf32>
    %202 = tpu.matmul %201, %7, %cst_30 {dimension_numbers = #tpu.dot_dimension_numbers<[1], [0], [0], [1], [0, 0, 1, 1], [], []>} : vector<8x32xbf16>, vector<32x128xbf16>, vector<8x128xf32> -> vector<8x128xf32>
    %203 = vector.extract_strided_slice %5 {offsets = [40, 0], sizes = [8, 128], strides = [1, 1]} : vector<64x128xf32> to vector<8x128xf32>
    %204 = arith.addf %203, %182 : vector<8x128xf32>
    %205 = arith.negf %204 : vector<8x128xf32>
    %206 = math.exp %205 : vector<8x128xf32>
    %cst_31 = arith.constant 1.000000e+00 : f32
    %207 = vector.broadcast %cst_31 : f32 to vector<8x128xf32>
    %208 = arith.addf %207, %206 : vector<8x128xf32>
    %209 = arith.divf %207, %208 : vector<8x128xf32>
    %210 = math.tanh %204 : vector<8x128xf32>
    %211 = vector.extract_strided_slice %209 {offsets = [0, 0], sizes = [8, 32], strides = [1, 1]} : vector<8x128xf32> to vector<8x32xf32>
    %212 = vector.extract_strided_slice %209 {offsets = [0, 32], sizes = [8, 32], strides = [1, 1]} : vector<8x128xf32> to vector<8x32xf32>
    %213 = vector.extract_strided_slice %210 {offsets = [0, 64], sizes = [8, 32], strides = [1, 1]} : vector<8x128xf32> to vector<8x32xf32>
    %214 = vector.extract_strided_slice %209 {offsets = [0, 96], sizes = [8, 32], strides = [1, 1]} : vector<8x128xf32> to vector<8x32xf32>
    %215 = arith.mulf %212, %177 : vector<8x32xf32>
    %216 = arith.mulf %211, %213 : vector<8x32xf32>
    %217 = arith.addf %215, %216 : vector<8x32xf32>
    %218 = math.tanh %217 : vector<8x32xf32>
    %219 = arith.mulf %214, %218 : vector<8x32xf32>
    %220 = arith.truncf %219 : vector<8x32xf32> to vector<8x32xbf16>
    %cst_32 = arith.constant dense<0.000000e+00> : vector<8x256xf32>
    %221 = tpu.matmul %220, %6, %cst_32 {dimension_numbers = #tpu.dot_dimension_numbers<[1], [0], [0], [1], [0, 0, 1, 1], [], []>} : vector<8x32xbf16>, vector<32x256xbf16>, vector<8x256xf32> -> vector<8x256xf32>
    %222 = vector.extract_strided_slice %221 {offsets = [0, 0], sizes = [8, 128], strides = [1, 1]} : vector<8x256xf32> to vector<8x128xf32>
    %223 = vector.extract_strided_slice %221 {offsets = [0, 128], sizes = [8, 128], strides = [1, 1]} : vector<8x256xf32> to vector<8x128xf32>
    %224 = arith.addf %223, %202 : vector<8x128xf32>
    %225 = arith.addf %224, %10 : vector<8x128xf32>
    %226 = arith.negf %225 : vector<8x128xf32>
    %227 = math.exp %226 : vector<8x128xf32>
    %cst_33 = arith.constant 1.000000e+00 : f32
    %228 = vector.broadcast %cst_33 : f32 to vector<8x128xf32>
    %229 = arith.addf %228, %227 : vector<8x128xf32>
    %230 = arith.divf %228, %229 : vector<8x128xf32>
    %231 = math.tanh %225 : vector<8x128xf32>
    %232 = vector.extract_strided_slice %230 {offsets = [0, 0], sizes = [8, 32], strides = [1, 1]} : vector<8x128xf32> to vector<8x32xf32>
    %233 = vector.extract_strided_slice %230 {offsets = [0, 32], sizes = [8, 32], strides = [1, 1]} : vector<8x128xf32> to vector<8x32xf32>
    %234 = vector.extract_strided_slice %231 {offsets = [0, 64], sizes = [8, 32], strides = [1, 1]} : vector<8x128xf32> to vector<8x32xf32>
    %235 = vector.extract_strided_slice %230 {offsets = [0, 96], sizes = [8, 32], strides = [1, 1]} : vector<8x128xf32> to vector<8x32xf32>
    %236 = arith.mulf %233, %198 : vector<8x32xf32>
    %237 = arith.mulf %232, %234 : vector<8x32xf32>
    %238 = arith.addf %236, %237 : vector<8x32xf32>
    %239 = math.tanh %238 : vector<8x32xf32>
    %240 = arith.mulf %235, %239 : vector<8x32xf32>
    %241 = arith.truncf %240 : vector<8x32xf32> to vector<8x32xbf16>
    %cst_34 = arith.constant dense<0.000000e+00> : vector<8x128xf32>
    %242 = tpu.matmul %241, %7, %cst_34 {dimension_numbers = #tpu.dot_dimension_numbers<[1], [0], [0], [1], [0, 0, 1, 1], [], []>} : vector<8x32xbf16>, vector<32x128xbf16>, vector<8x128xf32> -> vector<8x128xf32>
    %243 = vector.extract_strided_slice %5 {offsets = [48, 0], sizes = [8, 128], strides = [1, 1]} : vector<64x128xf32> to vector<8x128xf32>
    %244 = arith.addf %243, %222 : vector<8x128xf32>
    %245 = arith.negf %244 : vector<8x128xf32>
    %246 = math.exp %245 : vector<8x128xf32>
    %cst_35 = arith.constant 1.000000e+00 : f32
    %247 = vector.broadcast %cst_35 : f32 to vector<8x128xf32>
    %248 = arith.addf %247, %246 : vector<8x128xf32>
    %249 = arith.divf %247, %248 : vector<8x128xf32>
    %250 = math.tanh %244 : vector<8x128xf32>
    %251 = vector.extract_strided_slice %249 {offsets = [0, 0], sizes = [8, 32], strides = [1, 1]} : vector<8x128xf32> to vector<8x32xf32>
    %252 = vector.extract_strided_slice %249 {offsets = [0, 32], sizes = [8, 32], strides = [1, 1]} : vector<8x128xf32> to vector<8x32xf32>
    %253 = vector.extract_strided_slice %250 {offsets = [0, 64], sizes = [8, 32], strides = [1, 1]} : vector<8x128xf32> to vector<8x32xf32>
    %254 = vector.extract_strided_slice %249 {offsets = [0, 96], sizes = [8, 32], strides = [1, 1]} : vector<8x128xf32> to vector<8x32xf32>
    %255 = arith.mulf %252, %217 : vector<8x32xf32>
    %256 = arith.mulf %251, %253 : vector<8x32xf32>
    %257 = arith.addf %255, %256 : vector<8x32xf32>
    %258 = math.tanh %257 : vector<8x32xf32>
    %259 = arith.mulf %254, %258 : vector<8x32xf32>
    %260 = arith.truncf %259 : vector<8x32xf32> to vector<8x32xbf16>
    %cst_36 = arith.constant dense<0.000000e+00> : vector<8x256xf32>
    %261 = tpu.matmul %260, %6, %cst_36 {dimension_numbers = #tpu.dot_dimension_numbers<[1], [0], [0], [1], [0, 0, 1, 1], [], []>} : vector<8x32xbf16>, vector<32x256xbf16>, vector<8x256xf32> -> vector<8x256xf32>
    %262 = vector.extract_strided_slice %261 {offsets = [0, 0], sizes = [8, 128], strides = [1, 1]} : vector<8x256xf32> to vector<8x128xf32>
    %263 = vector.extract_strided_slice %261 {offsets = [0, 128], sizes = [8, 128], strides = [1, 1]} : vector<8x256xf32> to vector<8x128xf32>
    %264 = arith.addf %263, %242 : vector<8x128xf32>
    %265 = arith.addf %264, %10 : vector<8x128xf32>
    %266 = arith.negf %265 : vector<8x128xf32>
    %267 = math.exp %266 : vector<8x128xf32>
    %cst_37 = arith.constant 1.000000e+00 : f32
    %268 = vector.broadcast %cst_37 : f32 to vector<8x128xf32>
    %269 = arith.addf %268, %267 : vector<8x128xf32>
    %270 = arith.divf %268, %269 : vector<8x128xf32>
    %271 = math.tanh %265 : vector<8x128xf32>
    %272 = vector.extract_strided_slice %270 {offsets = [0, 0], sizes = [8, 32], strides = [1, 1]} : vector<8x128xf32> to vector<8x32xf32>
    %273 = vector.extract_strided_slice %270 {offsets = [0, 32], sizes = [8, 32], strides = [1, 1]} : vector<8x128xf32> to vector<8x32xf32>
    %274 = vector.extract_strided_slice %271 {offsets = [0, 64], sizes = [8, 32], strides = [1, 1]} : vector<8x128xf32> to vector<8x32xf32>
    %275 = vector.extract_strided_slice %270 {offsets = [0, 96], sizes = [8, 32], strides = [1, 1]} : vector<8x128xf32> to vector<8x32xf32>
    %276 = arith.mulf %273, %238 : vector<8x32xf32>
    %277 = arith.mulf %272, %274 : vector<8x32xf32>
    %278 = arith.addf %276, %277 : vector<8x32xf32>
    %279 = math.tanh %278 : vector<8x32xf32>
    %280 = arith.mulf %275, %279 : vector<8x32xf32>
    %281 = arith.truncf %280 : vector<8x32xf32> to vector<8x32xbf16>
    %cst_38 = arith.constant dense<0.000000e+00> : vector<8x128xf32>
    %282 = tpu.matmul %281, %7, %cst_38 {dimension_numbers = #tpu.dot_dimension_numbers<[1], [0], [0], [1], [0, 0, 1, 1], [], []>} : vector<8x32xbf16>, vector<32x128xbf16>, vector<8x128xf32> -> vector<8x128xf32>
    %283 = vector.extract_strided_slice %5 {offsets = [56, 0], sizes = [8, 128], strides = [1, 1]} : vector<64x128xf32> to vector<8x128xf32>
    %284 = arith.addf %283, %262 : vector<8x128xf32>
    %285 = arith.negf %284 : vector<8x128xf32>
    %286 = math.exp %285 : vector<8x128xf32>
    %cst_39 = arith.constant 1.000000e+00 : f32
    %287 = vector.broadcast %cst_39 : f32 to vector<8x128xf32>
    %288 = arith.addf %287, %286 : vector<8x128xf32>
    %289 = arith.divf %287, %288 : vector<8x128xf32>
    %290 = math.tanh %284 : vector<8x128xf32>
    %291 = vector.extract_strided_slice %289 {offsets = [0, 0], sizes = [8, 32], strides = [1, 1]} : vector<8x128xf32> to vector<8x32xf32>
    %292 = vector.extract_strided_slice %289 {offsets = [0, 32], sizes = [8, 32], strides = [1, 1]} : vector<8x128xf32> to vector<8x32xf32>
    %293 = vector.extract_strided_slice %290 {offsets = [0, 64], sizes = [8, 32], strides = [1, 1]} : vector<8x128xf32> to vector<8x32xf32>
    %294 = vector.extract_strided_slice %289 {offsets = [0, 96], sizes = [8, 32], strides = [1, 1]} : vector<8x128xf32> to vector<8x32xf32>
    %295 = arith.mulf %292, %257 : vector<8x32xf32>
    %296 = arith.mulf %291, %293 : vector<8x32xf32>
    %297 = arith.addf %295, %296 : vector<8x32xf32>
    %298 = math.tanh %297 : vector<8x32xf32>
    %299 = arith.mulf %294, %298 : vector<8x32xf32>
    %300 = arith.truncf %299 : vector<8x32xf32> to vector<8x32xbf16>
    %cst_40 = arith.constant dense<0.000000e+00> : vector<8x256xf32>
    %301 = tpu.matmul %300, %6, %cst_40 {dimension_numbers = #tpu.dot_dimension_numbers<[1], [0], [0], [1], [0, 0, 1, 1], [], []>} : vector<8x32xbf16>, vector<32x256xbf16>, vector<8x256xf32> -> vector<8x256xf32>
    %302 = vector.extract_strided_slice %301 {offsets = [0, 128], sizes = [8, 128], strides = [1, 1]} : vector<8x256xf32> to vector<8x128xf32>
    %303 = arith.addf %302, %282 : vector<8x128xf32>
    %304 = arith.addf %303, %10 : vector<8x128xf32>
    %305 = arith.negf %304 : vector<8x128xf32>
    %306 = math.exp %305 : vector<8x128xf32>
    %cst_41 = arith.constant 1.000000e+00 : f32
    %307 = vector.broadcast %cst_41 : f32 to vector<8x128xf32>
    %308 = arith.addf %307, %306 : vector<8x128xf32>
    %309 = arith.divf %307, %308 : vector<8x128xf32>
    %310 = math.tanh %304 : vector<8x128xf32>
    %311 = vector.extract_strided_slice %309 {offsets = [0, 0], sizes = [8, 32], strides = [1, 1]} : vector<8x128xf32> to vector<8x32xf32>
    %312 = vector.extract_strided_slice %309 {offsets = [0, 32], sizes = [8, 32], strides = [1, 1]} : vector<8x128xf32> to vector<8x32xf32>
    %313 = vector.extract_strided_slice %310 {offsets = [0, 64], sizes = [8, 32], strides = [1, 1]} : vector<8x128xf32> to vector<8x32xf32>
    %314 = vector.extract_strided_slice %309 {offsets = [0, 96], sizes = [8, 32], strides = [1, 1]} : vector<8x128xf32> to vector<8x32xf32>
    %315 = arith.mulf %312, %278 : vector<8x32xf32>
    %316 = arith.mulf %311, %313 : vector<8x32xf32>
    %317 = arith.addf %315, %316 : vector<8x32xf32>
    %318 = math.tanh %317 : vector<8x32xf32>
    %319 = arith.mulf %314, %318 : vector<8x32xf32>
    %c0_42 = arith.constant 0 : index
    %c0_43 = arith.constant 0 : index
    %320 = vector.load %arg6[%c0_42, %c0_43] : memref<1x32xf32, #tpu.memory_space<vmem>>, vector<1x32xf32>
    %321 = vector.broadcast %320 : vector<1x32xf32> to vector<8x32xf32>
    %322 = arith.mulf %319, %321 : vector<8x32xf32>
    %cst_44 = arith.constant dense<0.000000e+00> : vector<8xf32>
    %323 = vector.multi_reduction <add>, %322, %cst_44 [1] : vector<8x32xf32> to vector<8xf32>
    %324 = vector.shape_cast %323 : vector<8xf32> to vector<8x1xf32>
    %c0_45 = arith.constant 0 : index
    %c0_46 = arith.constant 0 : index
    %325 = vector.load %arg7[%c0_45, %c0_46] : memref<1x1xf32, #tpu.memory_space<vmem>>, vector<1x1xf32>
    %326 = vector.broadcast %325 : vector<1x1xf32> to vector<8x1xf32>
    %327 = arith.addf %324, %326 : vector<8x1xf32>
    %c0_47 = arith.constant 0 : index
    %c0_48 = arith.constant 0 : index
    %328 = vector.load %arg8[%c0_47, %c0_48] : memref<8x1xf32, #tpu.memory_space<vmem>>, vector<8x1xf32>
    tpu.vector_store %arg8[%c0_47, %c0_48], %327 {strides = array<i32>} : memref<8x1xf32, #tpu.memory_space<vmem>>, vector<8x1xf32>,
    return
  }
}

</mosaic_0001>

<bundles_post_ra>
// kernel: tpu_custom_call.1
= control target key start
LH: loop header
LB: loop body
LE: loop exit
PB: predicated region body
PF: predicated region fallthrough
CT: control target
= control target key end

     0   :  { %s2043_s0 = inlined_call_operand.vmem [shape: bf16[64,8], index: 0, kind: input, shape index: {}]   ;;  %s2044_s1 = inlined_call_operand.hbm [shape: bf16[8,128], index: 1, kind: input, shape index: {}]   ;;  %s2045_s2 = inlined_call_operand.vmem [shape: bf16[32,256], index: 2, kind: input, shape index: {}]   ;;  %s2046_s3 = inlined_call_operand.vmem [shape: bf16[32,128], index: 3, kind: input, shape index: {}]   ;;  %s2047_s4 = inlined_call_operand.vmem [shape: f32[1,128], index: 4, kind: input, shape index: {}]   ;;  %s2048_s5 = inlined_call_operand.vmem [shape: f32[1,128], index: 5, kind: input, shape index: {}]   ;;  %s2049_s6 = inlined_call_operand.vmem [shape: f32[1,32], index: 6, kind: input, shape index: {}]   ;;  %s2050_s7 = inlined_call_operand.<no memory space> [shape: f32[1,1], index: 7, kind: input, shape index: {}]   ;;  %s2051_s8 = inlined_call_operand.vmem [shape: f32[8,1], index: 8, kind: output, shape index: {}]  }
   0x1   :  { %v13_v0 = vstv %s2050_s7 }
   0x2   :  { %14 = vst [vmem:[#allocation2] sm:$0x1] %v13_v0 }
   0x3   :  { %15 = vsyncpa [#allocation4], 0  ;;  %s1669_s29 = smov [#allocation3]   ;;  %s1645_s11 = scalar_lea.hbm %s2044_s1, 64 }
   0x4   :  { %s24_s30 = sshll.u32 %s1669_s29, 4  ;;  %p1646_p0 = scmp.ne.s32.totalorder %s2044_s1, %s1645_s11  ;;  %s25_s30 = int_to_ptr.vmem [resolvable:$true] %s24_s30 }
   0x5   :  { %p1649_p1 = scmp.lt.u32.totalorder %s1645_s11, %s2044_s1 }
   0x7   :  { %p1651_p2 = pnand %p1649_p1, %p1646_p0 }
   0x9   :  { %1654 = shalt.err (!%p1651_p2)
}
   0xa   :  { %s1655_s7 = scalar_lea.vmem %s25_s30, 64  ;;  %p1660_p4 = scmp.lt.s32.totalorder %s25_s30, %s25_s30 }
   0xb   :  { %p1656_p3 = scmp.ne.s32.totalorder %s25_s30, %s1655_s7  ;;  %p1661_p5 = scmp.lt.s32.totalorder %s1655_s7, %s1655_s7 }
   0xd   :  { %p1662_p6 = por %p1661_p5, %p1660_p4 }
   0xf   :  { %p1663_p7 = pnand %p1662_p6, %p1656_p3 }
  0x11   :  { %1666 = shalt.err (!%p1663_p7)
}
  0x12   :  { %27 = dma.hbm_to_vmem [thread:$0]  %s2044_s1, 64, %s25_s30, [#allocation4]  }
  0x13   :  { %1667 = dma.done.wait [#allocation4], 64  }
  0x14   :  { %1668 = vsyncadd [#allocation4], 4294967232  ;;  %vm93_vm0 = vcmask 1043456   ;;  %vm80_vm1 = vcmask 64512   ;;  %v52_v1 = vld [vmem:[#allocation3] sm:$0xf] }
  0x15   :  { %1497 = vmatprep.subr.msk.bf16.mxu0 %vm93_vm0, %v52_v1  ;;  %v95_v2 = vsel %vm93_vm0, %v52_v1, 0  ;;  %v1505_v3 = vld [vmem:[%s2043_s0] sm:$0xff]   ;;  %v1506_v4 = vld [vmem:[%s2043_s0 + $0x8] sm:$0xff]   ;;  %s1670_s23 = smov 64   ;;  %v1768_v20 = vld [vmem:[%s2045_s2 + $0x14] ss:$8 sps:$4 sm:$0xff]  }
  0x16   :  { %1432 = vmatpush3.bf16.msra.mxu0 %v95_v2  ;;  %1433 = vmatprep.mubr.msk.bf16.mxu0 %vm80_vm1, %v1505_v3  ;;  %v1747_v5 = vld [vmem:[%s2047_s4] ss:$0 sm:$0xff]  ;;  %v1758_v18 = vld [vmem:[%s2045_s2 + $0x4] ss:$8 sps:$4 sm:$0xff]   ;;  %v1671_v21 = vmov 0   ;;  %s1672_s9 = smov 96  }
  0x17   :  { %v1763_v19 = vld [vmem:[%s2045_s2] ss:$8 sps:$4 sm:$0xff]   ;;  %223 = vmatprep.subr.bf16.mxu1 %v1758_v18  ;;  %255 = vmatprep.mubr.bf16.mxu1 %v1671_v21  ;;  %v1776_v22 = vld [vmem:[%s2045_s2 + $0x10] ss:$8 sps:$4 sm:$0xff]   ;;  %s1673_s2 = smov 32   ;;  %vm219_vm2 = vcmask 261120  }
  0x18   :  { %224 = vmatpush1.bf16.msra.mxu1 %v1763_v19  ;;  %378 = vmatprep.subr.bf16.mxu0 %v1758_v18  ;;  %v1793_v29 = vld [vmem:[%s2048_s5] ss:$0 sm:$0xff]  ;;  %v1674_v52 = vmov 0.0   ;;  %v1814_v55 = vld [vmem:[%s2046_s3 + $0x8] sm:$0xff]   ;;  %vm1675_vm3 = vmmov 0   ;;  %v1515_v58 = vld [vmem:[%s2043_s0 + $0x10] sm:$0xff]  }
  0x19   :  { %1434 = vmatmul.mubr.msk.bf16.vlgmr.msra.gmra.mrb[0].mxu0 %vm80_vm1, %v1506_v4  ;;  %225 = vmatprep.subr.bf16.mxu1 %v1768_v20  ;;  %v1805_v51 = vld [vmem:[%s2046_s3] sm:$0xff]   ;;  %v1516_v59 = vld [vmem:[%s2043_s0 + $0x18] sm:$0xff]   ;;  %vm1349_vm4 = vcmask 7168  }
  0x1a   :  { %379 = vmatpush1.bf16.msra.mxu0 %v1763_v19  ;;  %1437 = vmatprep.mubr.msk.bf16.mxu0 %vm80_vm1, %v1515_v58 }
  0x1b   :  { %380 = vmatprep.subr.bf16.mxu0 %v1768_v20 }
  0x1c   :  { %226 = vmatpush1.bf16.msra.mxu1 %v1776_v22 }
  0x1d   :  { %1441 = vmatprep.subr.bf16.mxu1 %v1674_v52 }
  0x1e   :  { %381 = vmatpush1.bf16.msra.mxu0 %v1776_v22 }
  0x1f   :  { %528 = vmatprep.subr.bf16.mxu0 %v1758_v18 }
  0x21   :  { %1438 = vmatmul.mubr.msk.bf16.gmra.mrb[4].mxu0 %vm80_vm1, %v1516_v59 }
  0x22   :  { %410 = vmatprep.mubr.bf16.mxu0 %v1671_v21 }
  0xec   :  { %v1749_v6 = vpop.f32.mrb[0].mxu0 }
  0xed   :  { %v131_v7 = vpop.f32.mrb[1].mxu0 }
  0xee   :  { %v132_v8 = vadd.f32 %v1747_v5, %v131_v7  ;;  %v1752_v9 = vpop.f32.mrb[2].mxu0 }
  0xef   :  { %v134_v10 = vpop.f32.mrb[3].mxu0 }
  0xf0   :  { %1517 = vtanh.f32 %v132_v8  ;;  %v1366_v12 = vmul.f32 -1.442695, %v132_v8  ;;  %v135_v28 = vadd.f32 %v1747_v5, %v134_v10 }
  0xf2   :  { %1519 = vpow2.f32 %v1366_v12 }
  0xf4   :  { %v1842_v4 = vpop.f32.mrb[4].mxu0 }
  0xf5   :  { %v1844_v7 = vpop.f32.mrb[5].mxu0 }
  0xf6   :  { %v1846_v8 = vpop.f32.mrb[6].mxu0 }
  0xf7   :  { %v1848_v10 = vpop.f32.mrb[7].mxu0 }
  0xfa   :  { %v1518_v11 = vpop.eup %1517 }
  0xfb   :  { %185 = vrot.lane.b32.xlu0 %v1518_v11, %s1670_s23 }
  0xfc   :  { %v1520_v13 = vpop.eup %1519 }
  0xfd   :  { %v180_v14 = vadd.f32 1.0, %v1520_v13 }
  0xff   :  { %1521 = vrcp.f32 %v180_v14 }
 0x109   :  { %v1522_v15 = vpop.eup %1521 }
 0x16d   :  { %v186_v16 = vpop.permute.xlu0 %185 }
 0x16e   :  { %v188_v17 = vmul.f32 %v1522_v15, %v186_v16  ;;  %v140_v16 = vadd.f32 %v1749_v6, %v1747_v5 }
 0x170   :  { %1523 = vtanh.f32 %v188_v17 }
 0x17a   :  { %v1524_v23 = vpop.eup %1523 }
 0x17b   :  { %191 = vrot.lane.b32.xlu0 %v1524_v23, %s1672_s9 }
 0x17f   :  { %351 = vrot.lane.b32.xlu0 %v188_v17, %s1673_s2 }
 0x1ed   :  { %v192_v24 = vpop.permute.xlu0 %191 }
 0x1ee   :  { %v194_v25 = vmul.f32 %v1522_v15, %v192_v24 }
 0x1f0   :  { %v195_v26 = vpack.c.bf16 %v194_v25, %v194_v25 }
 0x1f1   :  { %v352_v44 = vpop.permute.xlu0 %351 }
 0x1f2   :  { %197 = vrot.lane.b32.xlu1 %v195_v26, %s1673_s2 }
 0x264   :  { %v198_v27 = vpop.permute.xlu1 %197 }
 0x265   :  { %1371 = vmatmul.mubr.msk.bf16.vlgmr.msra.gmra.mrb[0].mxu1 %vm219_vm2, %v198_v27 }
 0x266   :  { %1442 = vmatpush3.bf16.msra.mxu1 %v1805_v51  ;;  %1445 = vmatprep.mubr.msk.bf16.mxu1 %vm1675_vm3, %v1674_v52 }
 0x267   :  { %1443 = vmatprep.subr.bf16.mxu1 %v1674_v52 }
 0x26a   :  { %1444 = vmatpush3.bf16.msra.mxu1 %v1814_v55 }
 0x26b   :  { %1449 = vmatprep.subr.bf16.mxu1 %v1674_v52 }
 0x338   :  { %v257_v30 = vpop.f32.mrb[0].mxu1 }
 0x339   :  { %v342_v31 = vadd.f32 %v257_v30, %v135_v28  ;;  %v259_v32 = vpop.f32.mrb[1].mxu1 }
 0x33a   :  { %v264_v33 = vadd.f32 %v1793_v29, %v259_v32  ;;  %v261_v34 = vpop.f32.mrb[2].mxu1 }
 0x33b   :  { %1525 = vtanh.f32 %v342_v31  ;;  %v262_v35 = vpop.f32.mrb[3].mxu1  ;;  %v1376_v38 = vmul.f32 -1.442695, %v342_v31 }
 0x33c   :  { %1527 = vtanh.f32 %v264_v33  ;;  %v1372_v39 = vmul.f32 -1.442695, %v264_v33 }
 0x33d   :  { %1529 = vpow2.f32 %v1376_v38 }
 0x33e   :  { %1531 = vpow2.f32 %v1372_v39 }
 0x345   :  { %v1526_v36 = vpop.eup %1525 }
 0x346   :  { %v1528_v37 = vpop.eup %1527  ;;  %356 = vrot.lane.b32.xlu1 %v1526_v36, %s1670_s23 }
 0x347   :  { %273 = vrot.lane.b32.xlu0 %v1528_v37, %s1670_s23  ;;  %v1530_v40 = vpop.eup %1529 }
 0x348   :  { %v1532_v41 = vpop.eup %1531  ;;  %v346_v42 = vadd.f32 1.0, %v1530_v40 }
 0x349   :  { %v268_v43 = vadd.f32 1.0, %v1532_v41 }
 0x34a   :  { %1533 = vrcp.f32 %v346_v42 }
 0x34b   :  { %1535 = vrcp.f32 %v268_v43 }
 0x354   :  { %v1534_v45 = vpop.eup %1533 }
 0x355   :  { %v1536_v47 = vpop.eup %1535  ;;  %v354_v54 = vmul.f32 %v1534_v45, %v352_v44 }
 0x3b8   :  { %v357_v46 = vpop.permute.xlu1 %356 }
 0x3b9   :  { %v359_v48 = vmul.f32 %v1534_v45, %v357_v46  ;;  %v274_v49 = vpop.permute.xlu0 %273 }
 0x3ba   :  { %v1798_v50 = vmul.f32 %v1536_v47, %v274_v49 }
 0x3bb   :  { %361 = vrot.lane.b32.xlu1 %v359_v48, %s1673_s2 }
 0x3bc   :  { %1537 = vtanh.f32 %v1798_v50 }
 0x3c6   :  { %v1538_v53 = vpop.eup %1537 }
 0x3c7   :  { %279 = vrot.lane.b32.xlu0 %v1538_v53, %s1672_s9 }
 0x42d   :  { %v362_v56 = vpop.permute.xlu1 %361 }
 0x42e   :  { %v1816_v57 = vadd.f32 %v362_v56, %v354_v54 }
 0x430   :  { %1539 = vtanh.f32 %v1816_v57 }
 0x439   :  { %v280_v60 = vpop.permute.xlu0 %279 }
 0x43a   :  { %v1540_v61 = vpop.eup %1539  ;;  %v282_v62 = vmul.f32 %v1536_v47, %v280_v60 }
 0x43b   :  { %367 = vrot.lane.b32.xlu1 %v1540_v61, %s1670_s23 }
 0x43c   :  { %v283_v63 = vpack.c.bf16 %v282_v62, %v282_v62 }
 0x43e   :  { %285 = vrot.lane.b32.xlu0 %v283_v63, %s1673_s2  ;;  %v143_v63 = vadd.f32 %v1752_v9, %v1747_v5 }
 0x4ad   :  { %v368_v0 = vpop.permute.xlu1 %367 }
 0x4ae   :  { %v370_v1 = vmul.f32 %v1534_v45, %v368_v0 }
 0x4b0   :  { %v371_v2 = vpack.c.bf16 %v370_v1, %v370_v1  ;;  %v286_v3 = vpop.permute.xlu0 %285 }
 0x4b1   :  { %1446 = vmatmul.mubr.msk.bf16.vlgmr.msra.gmra.mrb[4].mxu1 %vm219_vm2, %v286_v3 }
 0x4b2   :  { %373 = vrot.lane.b32.xlu1 %v371_v2, %s1673_s2  ;;  %1450 = vmatpush3.bf16.msra.mxu1 %v1805_v51 }
 0x4b3   :  { %1451 = vmatprep.subr.bf16.mxu1 %v1674_v52  ;;  %1453 = vmatprep.mubr.msk.bf16.mxu1 %vm1675_vm3, %v1674_v52 }
 0x4b6   :  { %1452 = vmatpush3.bf16.msra.mxu1 %v1814_v55 }
 0x4b7   :  { %1457 = vmatprep.subr.bf16.mxu1 %v1674_v52 }
 0x524   :  { %v374_v11 = vpop.permute.xlu1 %373 }
 0x525   :  { %1377 = vmatmul.mubr.msk.bf16.vlgmr.msra.gmra.mrb[8].mxu0 %vm219_vm2, %v374_v11 }
 0x526   :  { %529 = vmatpush1.bf16.msra.mxu0 %v1763_v19  ;;  %560 = vmatprep.mubr.bf16.mxu0 %v1671_v21 }
 0x527   :  { %530 = vmatprep.subr.bf16.mxu0 %v1768_v20 }
 0x52a   :  { %531 = vmatpush1.bf16.msra.mxu0 %v1776_v22 }
 0x52b   :  { %674 = vmatprep.subr.bf16.mxu0 %v1758_v18 }
 0x584   :  { %v336_v12 = vpop.f32.mrb[4].mxu1 }
 0x585   :  { %v1447_v13 = vpop.f32.mrb[5].mxu1 }
 0x586   :  { %v339_v14 = vpop.f32.mrb[6].mxu1 }
 0x587   :  { %v1448_v15 = vpop.f32.mrb[7].mxu1 }
 0x5f8   :  { %v412_v17 = vpop.f32.mrb[8].mxu0 }
 0x5f9   :  { %v496_v23 = vadd.f32 %v412_v17, %v140_v16  ;;  %v414_v24 = vpop.f32.mrb[9].mxu0 }
 0x5fa   :  { %v419_v25 = vadd.f32 %v414_v24, %v336_v12  ;;  %v416_v26 = vpop.f32.mrb[10].mxu0 }
 0x5fb   :  { %1541 = vtanh.f32 %v496_v23  ;;  %v417_v27 = vpop.f32.mrb[11].mxu0  ;;  %v1380_v6 = vmul.f32 -1.442695, %v496_v23 }
 0x5fc   :  { %v420_v28 = vadd.f32 %v1793_v29, %v419_v25 }
 0x5fe   :  { %1543 = vtanh.f32 %v420_v28  ;;  %v1378_v32 = vmul.f32 -1.442695, %v420_v28 }
 0x5ff   :  { %1545 = vpow2.f32 %v1380_v6 }
 0x600   :  { %1547 = vpow2.f32 %v1378_v32 }
 0x605   :  { %v1542_v30 = vpop.eup %1541 }
 0x606   :  { %506 = vrot.lane.b32.xlu1 %v1542_v30, %s1670_s23 }
 0x608   :  { %v1544_v31 = vpop.eup %1543 }
 0x609   :  { %434 = vrot.lane.b32.xlu0 %v1544_v31, %s1670_s23  ;;  %v1546_v33 = vpop.eup %1545 }
 0x60a   :  { %429 = vrot.lane.b32.xlu1 %v1798_v50, %s1673_s2  ;;  %v1548_v34 = vpop.eup %1547  ;;  %v500_v35 = vadd.f32 1.0, %v1546_v33 }
 0x60b   :  { %v424_v36 = vadd.f32 1.0, %v1548_v34 }
 0x60c   :  { %1549 = vrcp.f32 %v500_v35 }
 0x60d   :  { %1551 = vrcp.f32 %v424_v36 }
 0x616   :  { %v1550_v37 = vpop.eup %1549 }
 0x617   :  { %v1552_v40 = vpop.eup %1551  ;;  %v504_v44 = vmul.f32 %v1550_v37, %v1816_v57 }
 0x678   :  { %v507_v38 = vpop.permute.xlu1 %506 }
 0x679   :  { %v509_v39 = vmul.f32 %v1550_v37, %v507_v38 }
 0x67b   :  { %511 = vrot.lane.b32.xlu0 %v509_v39, %s1673_s2  ;;  %v435_v41 = vpop.permute.xlu0 %434 }
 0x67c   :  { %v437_v42 = vmul.f32 %v1552_v40, %v435_v41  ;;  %v430_v43 = vpop.permute.xlu1 %429 }
 0x67d   :  { %v432_v47 = vmul.f32 %v1552_v40, %v430_v43 }
 0x67e   :  { %439 = vrot.lane.b32.xlu1 %v437_v42, %s1673_s2 }
 0x6ed   :  { %v512_v45 = vpop.permute.xlu0 %511 }
 0x6ee   :  { %v1866_v46 = vadd.f32 %v512_v45, %v504_v44 }
 0x6f0   :  { %1553 = vtanh.f32 %v1866_v46  ;;  %v440_v48 = vpop.permute.xlu1 %439 }
 0x6f1   :  { %v1869_v49 = vadd.f32 %v440_v48, %v432_v47 }
 0x6f3   :  { %1555 = vtanh.f32 %v1869_v49 }
 0x6fa   :  { %v1554_v50 = vpop.eup %1553 }
 0x6fb   :  { %517 = vrot.lane.b32.xlu0 %v1554_v50, %s1670_s23 }
 0x6fd   :  { %v1556_v53 = vpop.eup %1555 }
 0x6fe   :  { %445 = vrot.lane.b32.xlu1 %v1556_v53, %s1670_s23 }
 0x76d   :  { %v518_v54 = vpop.permute.xlu0 %517 }
 0x76e   :  { %v520_v56 = vmul.f32 %v1550_v37, %v518_v54  ;;  %v148_v54 = vadd.f32 %v1747_v5, %v1844_v7 }
 0x770   :  { %v521_v57 = vpack.c.bf16 %v520_v56, %v520_v56  ;;  %v446_v58 = vpop.permute.xlu1 %445 }
 0x771   :  { %v448_v59 = vmul.f32 %v1552_v40, %v446_v58 }
 0x772   :  { %523 = vrot.lane.b32.xlu0 %v521_v57, %s1673_s2 }
 0x773   :  { %v449_v60 = vpack.c.bf16 %v448_v59, %v448_v59 }
 0x775   :  { %451 = vrot.lane.b32.xlu1 %v449_v60, %s1673_s2 }
 0x7e4   :  { %v524_v61 = vpop.permute.xlu0 %523 }
 0x7e5   :  { %1381 = vmatmul.mubr.msk.bf16.vlgmr.msra.gmra.mrb[12].mxu0 %vm219_vm2, %v524_v61 }
 0x7e6   :  { %675 = vmatpush1.bf16.msra.mxu0 %v1763_v19  ;;  %706 = vmatprep.mubr.bf16.mxu0 %v1671_v21 }
 0x7e7   :  { %v452_v62 = vpop.permute.xlu1 %451  ;;  %676 = vmatprep.subr.bf16.mxu0 %v1768_v20 }
 0x7e8   :  { %1454 = vmatmul.mubr.msk.bf16.vlgmr.msra.gmra.mrb[8].mxu1 %vm219_vm2, %v452_v62 }
 0x7e9   :  { %1458 = vmatpush3.bf16.msra.mxu1 %v1805_v51  ;;  %1461 = vmatprep.mubr.msk.bf16.mxu1 %vm1675_vm3, %v1674_v52 }
 0x7ea   :  { %677 = vmatpush1.bf16.msra.mxu0 %v1776_v22  ;;  %1459 = vmatprep.subr.bf16.mxu1 %v1674_v52 }
 0x7eb   :  { %820 = vmatprep.subr.bf16.mxu0 %v1758_v18 }
 0x7ed   :  { %1460 = vmatpush3.bf16.msra.mxu1 %v1814_v55 }
 0x7ee   :  { %1465 = vmatprep.subr.bf16.mxu1 %v1674_v52 }
 0x8b8   :  { %v562_v0 = vpop.f32.mrb[12].mxu0 }
 0x8b9   :  { %v642_v1 = vadd.f32 %v562_v0, %v143_v63  ;;  %v564_v2 = vpop.f32.mrb[13].mxu0 }
 0x8ba   :  { %v566_v3 = vpop.f32.mrb[14].mxu0 }
 0x8bb   :  { %1557 = vtanh.f32 %v642_v1  ;;  %v490_v11 = vpop.f32.mrb[8].mxu1  ;;  %v567_v12 = vpop.f32.mrb[15].mxu0  ;;  %v1384_v9 = vmul.f32 -1.442695, %v642_v1 }
 0x8bc   :  { %v569_v13 = vadd.f32 %v564_v2, %v490_v11  ;;  %v1455_v14 = vpop.f32.mrb[9].mxu1 }
 0x8bd   :  { %v493_v15 = vpop.f32.mrb[10].mxu1 }
 0x8be   :  { %v570_v16 = vadd.f32 %v1793_v29, %v569_v13  ;;  %v1456_v17 = vpop.f32.mrb[11].mxu1 }
 0x8c0   :  { %1559 = vtanh.f32 %v570_v16  ;;  %v1382_v25 = vmul.f32 -1.442695, %v570_v16 }
 0x8c1   :  { %1561 = vpow2.f32 %v1384_v9 }
 0x8c2   :  { %1563 = vpow2.f32 %v1382_v25 }
 0x8c5   :  { %v1558_v23 = vpop.eup %1557 }
 0x8c6   :  { %652 = vrot.lane.b32.xlu0 %v1558_v23, %s1670_s23 }
 0x8ca   :  { %v1560_v24 = vpop.eup %1559 }
 0x8cb   :  { %580 = vrot.lane.b32.xlu1 %v1560_v24, %s1670_s23  ;;  %v1562_v26 = vpop.eup %1561 }
 0x8cc   :  { %v646_v27 = vadd.f32 1.0, %v1562_v26  ;;  %v1564_v28 = vpop.eup %1563 }
 0x8cd   :  { %v574_v30 = vadd.f32 1.0, %v1564_v28 }
 0x8ce   :  { %1565 = vrcp.f32 %v646_v27 }
 0x8cf   :  { %1567 = vrcp.f32 %v574_v30 }
 0x8d8   :  { %v1566_v31 = vpop.eup %1565 }
 0x8d9   :  { %v1568_v33 = vpop.eup %1567  ;;  %v650_v36 = vmul.f32 %v1566_v31, %v1866_v46 }
 0x8da   :  { %v578_v39 = vmul.f32 %v1568_v33, %v1869_v49 }
 0x938   :  { %v653_v6 = vpop.permute.xlu0 %652 }
 0x939   :  { %v655_v32 = vmul.f32 %v1566_v31, %v653_v6 }
 0x93b   :  { %657 = vrot.lane.b32.xlu0 %v655_v32, %s1673_s2 }
 0x93d   :  { %v581_v34 = vpop.permute.xlu1 %580 }
 0x93e   :  { %v583_v35 = vmul.f32 %v1568_v33, %v581_v34 }
 0x940   :  { %585 = vrot.lane.b32.xlu1 %v583_v35, %s1673_s2 }
 0x9ad   :  { %v658_v37 = vpop.permute.xlu0 %657 }
 0x9ae   :  { %v1897_v38 = vadd.f32 %v658_v37, %v650_v36 }
 0x9b0   :  { %1569 = vtanh.f32 %v1897_v38 }
 0x9b2   :  { %v586_v40 = vpop.permute.xlu1 %585 }
 0x9b3   :  { %v1901_v41 = vadd.f32 %v586_v40, %v578_v39 }
 0x9b5   :  { %1571 = vtanh.f32 %v1901_v41 }
 0x9ba   :  { %v1570_v42 = vpop.eup %1569 }
 0x9bb   :  { %663 = vrot.lane.b32.xlu0 %v1570_v42, %s1670_s23 }
 0x9bf   :  { %v1572_v43 = vpop.eup %1571 }
 0x9c0   :  { %591 = vrot.lane.b32.xlu1 %v1572_v43, %s1670_s23  ;;  %v151_v43 = vadd.f32 %v1747_v5, %v1848_v10 }
 0xa2d   :  { %v664_v44 = vpop.permute.xlu0 %663 }
 0xa2e   :  { %v666_v45 = vmul.f32 %v1566_v31, %v664_v44 }
 0xa30   :  { %v667_v46 = vpack.c.bf16 %v666_v45, %v666_v45 }
 0xa32   :  { %669 = vrot.lane.b32.xlu0 %v667_v46, %s1673_s2  ;;  %v592_v47 = vpop.permute.xlu1 %591 }
 0xa33   :  { %v594_v48 = vmul.f32 %v1568_v33, %v592_v47 }
 0xa35   :  { %v595_v50 = vpack.c.bf16 %v594_v48, %v594_v48 }
 0xa37   :  { %597 = vrot.lane.b32.xlu1 %v595_v50, %s1673_s2 }
 0xaa4   :  { %v670_v49 = vpop.permute.xlu0 %669 }
 0xaa5   :  { %1385 = vmatmul.mubr.msk.bf16.vlgmr.msra.gmra.mrb[16].mxu0 %vm219_vm2, %v670_v49 }
 0xaa6   :  { %821 = vmatpush1.bf16.msra.mxu0 %v1763_v19  ;;  %852 = vmatprep.mubr.bf16.mxu0 %v1671_v21 }
 0xaa7   :  { %822 = vmatprep.subr.bf16.mxu0 %v1768_v20 }
 0xaa9   :  { %v598_v53 = vpop.permute.xlu1 %597 }
 0xaaa   :  { %1462 = vmatmul.mubr.msk.bf16.vlgmr.msra.gmra.mrb[12].mxu1 %vm219_vm2, %v598_v53  ;;  %823 = vmatpush1.bf16.msra.mxu0 %v1776_v22 }
 0xaab   :  { %1466 = vmatpush3.bf16.msra.mxu1 %v1805_v51  ;;  %1469 = vmatprep.mubr.msk.bf16.mxu1 %vm1675_vm3, %v1674_v52 }
 0xaac   :  { %1467 = vmatprep.subr.bf16.mxu1 %v1674_v52  ;;  %966 = vmatprep.subr.bf16.mxu0 %v1758_v18 }
 0xaaf   :  { %1468 = vmatpush3.bf16.msra.mxu1 %v1814_v55 }
 0xab0   :  { %1473 = vmatprep.subr.bf16.mxu1 %v1674_v52 }
 0xb78   :  { %v708_v56 = vpop.f32.mrb[16].mxu0 }
 0xb79   :  { %v788_v57 = vadd.f32 %v708_v56, %v148_v54  ;;  %v710_v58 = vpop.f32.mrb[17].mxu0 }
 0xb7a   :  { %v712_v59 = vpop.f32.mrb[18].mxu0 }
 0xb7b   :  { %1573 = vtanh.f32 %v788_v57  ;;  %v713_v60 = vpop.f32.mrb[19].mxu0  ;;  %v1388_v7 = vmul.f32 -1.442695, %v788_v57 }
 0xb7d   :  { %v636_v61 = vpop.f32.mrb[12].mxu1 }
 0xb7e   :  { %v715_v62 = vadd.f32 %v710_v58, %v636_v61  ;;  %v1463_v63 = vpop.f32.mrb[13].mxu1 }
 0xb7f   :  { %v639_v0 = vpop.f32.mrb[14].mxu1 }
 0xb80   :  { %v716_v1 = vadd.f32 %v1793_v29, %v715_v62  ;;  %v1464_v2 = vpop.f32.mrb[15].mxu1 }
 0xb82   :  { %1575 = vtanh.f32 %v716_v1  ;;  %v1386_v12 = vmul.f32 -1.442695, %v716_v1 }
 0xb83   :  { %1577 = vpow2.f32 %v1388_v7 }
 0xb84   :  { %1579 = vpow2.f32 %v1386_v12 }
 0xb85   :  { %v1574_v3 = vpop.eup %1573 }
 0xb86   :  { %798 = vrot.lane.b32.xlu0 %v1574_v3, %s1670_s23 }
 0xb8c   :  { %v1576_v11 = vpop.eup %1575 }
 0xb8d   :  { %726 = vrot.lane.b32.xlu1 %v1576_v11, %s1670_s23  ;;  %v1578_v13 = vpop.eup %1577 }
 0xb8e   :  { %v792_v14 = vadd.f32 1.0, %v1578_v13  ;;  %v1580_v15 = vpop.eup %1579 }
 0xb8f   :  { %v720_v16 = vadd.f32 1.0, %v1580_v15 }
 0xb90   :  { %1581 = vrcp.f32 %v792_v14 }
 0xb91   :  { %1583 = vrcp.f32 %v720_v16 }
 0xb9a   :  { %v1582_v17 = vpop.eup %1581 }
 0xb9b   :  { %v1584_v9 = vpop.eup %1583  ;;  %v796_v27 = vmul.f32 %v1582_v17, %v1897_v38 }
 0xb9c   :  { %v724_v31 = vmul.f32 %v1584_v9, %v1901_v41 }
 0xbf8   :  { %v799_v23 = vpop.permute.xlu0 %798 }
 0xbf9   :  { %v801_v24 = vmul.f32 %v1582_v17, %v799_v23 }
 0xbfb   :  { %803 = vrot.lane.b32.xlu0 %v801_v24, %s1673_s2 }
 0xbff   :  { %v727_v25 = vpop.permute.xlu1 %726 }
 0xc00   :  { %v729_v26 = vmul.f32 %v1584_v9, %v727_v25 }
 0xc02   :  { %731 = vrot.lane.b32.xlu1 %v729_v26, %s1673_s2 }
 0xc6d   :  { %v804_v28 = vpop.permute.xlu0 %803 }
 0xc6e   :  { %v1929_v30 = vadd.f32 %v804_v28, %v796_v27 }
 0xc70   :  { %1585 = vtanh.f32 %v1929_v30 }
 0xc74   :  { %v732_v6 = vpop.permute.xlu1 %731 }
 0xc75   :  { %v1933_v32 = vadd.f32 %v732_v6, %v724_v31 }
 0xc77   :  { %1587 = vtanh.f32 %v1933_v32 }
 0xc7a   :  { %v1586_v33 = vpop.eup %1585 }
 0xc7b   :  { %809 = vrot.lane.b32.xlu0 %v1586_v33, %s1670_s23  ;;  %v156_v33 = vadd.f32 %v1842_v4, %v1747_v5 }
 0xc81   :  { %v1588_v34 = vpop.eup %1587 }
 0xc82   :  { %737 = vrot.lane.b32.xlu1 %v1588_v34, %s1670_s23 }
 0xced   :  { %v810_v35 = vpop.permute.xlu0 %809 }
 0xcee   :  { %v812_v36 = vmul.f32 %v1582_v17, %v810_v35 }
 0xcf0   :  { %v813_v37 = vpack.c.bf16 %v812_v36, %v812_v36 }
 0xcf2   :  { %815 = vrot.lane.b32.xlu0 %v813_v37, %s1673_s2 }
 0xcf4   :  { %v738_v38 = vpop.permute.xlu1 %737 }
 0xcf5   :  { %v740_v39 = vmul.f32 %v1584_v9, %v738_v38 }
 0xcf7   :  { %v741_v40 = vpack.c.bf16 %v740_v39, %v740_v39 }
 0xcf9   :  { %743 = vrot.lane.b32.xlu1 %v741_v40, %s1673_s2 }
 0xd64   :  { %v816_v41 = vpop.permute.xlu0 %815 }
 0xd65   :  { %1389 = vmatmul.mubr.msk.bf16.vlgmr.msra.gmra.mrb[20].mxu0 %vm219_vm2, %v816_v41 }
 0xd66   :  { %967 = vmatpush1.bf16.msra.mxu0 %v1763_v19  ;;  %998 = vmatprep.mubr.bf16.mxu0 %v1671_v21 }
 0xd67   :  { %968 = vmatprep.subr.bf16.mxu0 %v1768_v20 }
 0xd6a   :  { %969 = vmatpush1.bf16.msra.mxu0 %v1776_v22 }
 0xd6b   :  { %v744_v42 = vpop.permute.xlu1 %743  ;;  %1112 = vmatprep.subr.bf16.mxu0 %v1758_v18 }
 0xd6c   :  { %1470 = vmatmul.mubr.msk.bf16.vlgmr.msra.gmra.mrb[16].mxu1 %vm219_vm2, %v744_v42 }
 0xd6d   :  { %1474 = vmatpush3.bf16.msra.mxu1 %v1805_v51  ;;  %1477 = vmatprep.mubr.msk.bf16.mxu1 %vm1675_vm3, %v1674_v52 }
 0xd6e   :  { %1475 = vmatprep.subr.bf16.mxu1 %v1674_v52 }
 0xd71   :  { %1476 = vmatpush3.bf16.msra.mxu1 %v1814_v55 }
 0xd72   :  { %1481 = vmatprep.subr.bf16.mxu1 %v1674_v52 }
 0xe38   :  { %v854_v44 = vpop.f32.mrb[20].mxu0 }
 0xe39   :  { %v934_v45 = vadd.f32 %v854_v44, %v151_v43  ;;  %v856_v46 = vpop.f32.mrb[21].mxu0 }
 0xe3a   :  { %v858_v47 = vpop.f32.mrb[22].mxu0 }
 0xe3b   :  { %1589 = vtanh.f32 %v934_v45  ;;  %v859_v48 = vpop.f32.mrb[23].mxu0  ;;  %v1392_v10 = vmul.f32 -1.442695, %v934_v45 }
 0xe3f   :  { %v782_v50 = vpop.f32.mrb[16].mxu1 }
 0xe40   :  { %v861_v49 = vadd.f32 %v856_v46, %v782_v50  ;;  %v1471_v53 = vpop.f32.mrb[17].mxu1 }
 0xe41   :  { %v785_v54 = vpop.f32.mrb[18].mxu1 }
 0xe42   :  { %v862_v56 = vadd.f32 %v1793_v29, %v861_v49  ;;  %v1472_v57 = vpop.f32.mrb[19].mxu1 }
 0xe44   :  { %1591 = vtanh.f32 %v862_v56  ;;  %v1390_v60 = vmul.f32 -1.442695, %v862_v56 }
 0xe45   :  { %v1590_v58 = vpop.eup %1589  ;;  %1593 = vpow2.f32 %v1392_v10 }
 0xe46   :  { %944 = vrot.lane.b32.xlu0 %v1590_v58, %s1670_s23  ;;  %1595 = vpow2.f32 %v1390_v60 }
 0xe4e   :  { %v1592_v59 = vpop.eup %1591 }
 0xe4f   :  { %872 = vrot.lane.b32.xlu1 %v1592_v59, %s1670_s23  ;;  %v1594_v61 = vpop.eup %1593 }
 0xe50   :  { %v938_v62 = vadd.f32 1.0, %v1594_v61  ;;  %v1596_v63 = vpop.eup %1595 }
 0xe51   :  { %v866_v0 = vadd.f32 1.0, %v1596_v63 }
 0xe52   :  { %1597 = vrcp.f32 %v938_v62 }
 0xe53   :  { %1599 = vrcp.f32 %v866_v0 }
 0xe5c   :  { %v1598_v1 = vpop.eup %1597 }
 0xe5d   :  { %v1600_v11 = vpop.eup %1599  ;;  %v942_v13 = vmul.f32 %v1598_v1, %v1929_v30 }
 0xe5e   :  { %v870_v16 = vmul.f32 %v1600_v11, %v1933_v32 }
 0xeb8   :  { %v945_v2 = vpop.permute.xlu0 %944 }
 0xeb9   :  { %v947_v3 = vmul.f32 %v1598_v1, %v945_v2 }
 0xebb   :  { %949 = vrot.lane.b32.xlu0 %v947_v3, %s1673_s2 }
 0xec1   :  { %v873_v7 = vpop.permute.xlu1 %872 }
 0xec2   :  { %v875_v12 = vmul.f32 %v1600_v11, %v873_v7 }
 0xec4   :  { %877 = vrot.lane.b32.xlu1 %v875_v12, %s1673_s2 }
 0xf2d   :  { %v950_v14 = vpop.permute.xlu0 %949 }
 0xf2e   :  { %v1961_v15 = vadd.f32 %v950_v14, %v942_v13 }
 0xf30   :  { %1601 = vtanh.f32 %v1961_v15 }
 0xf36   :  { %v878_v17 = vpop.permute.xlu1 %877 }
 0xf37   :  { %v1965_v23 = vadd.f32 %v878_v17, %v870_v16 }
 0xf39   :  { %1603 = vtanh.f32 %v1965_v23 }
 0xf3a   :  { %v1602_v24 = vpop.eup %1601 }
 0xf3b   :  { %955 = vrot.lane.b32.xlu0 %v1602_v24, %s1670_s23 }
 0xf43   :  { %v1604_v9 = vpop.eup %1603 }
 0xf44   :  { %883 = vrot.lane.b32.xlu1 %v1604_v9, %s1670_s23 }
 0xfad   :  { %v956_v25 = vpop.permute.xlu0 %955 }
 0xfae   :  { %v958_v26 = vmul.f32 %v1598_v1, %v956_v25 }
 0xfb0   :  { %v959_v27 = vpack.c.bf16 %v958_v26, %v958_v26 }
 0xfb2   :  { %961 = vrot.lane.b32.xlu0 %v959_v27, %s1673_s2 }
 0xfb6   :  { %v884_v28 = vpop.permute.xlu1 %883 }
 0xfb7   :  { %v886_v30 = vmul.f32 %v1600_v11, %v884_v28 }
 0xfb9   :  { %v887_v31 = vpack.c.bf16 %v886_v30, %v886_v30 }
 0xfbb   :  { %889 = vrot.lane.b32.xlu1 %v887_v31, %s1673_s2 }
0x1024   :  { %v962_v6 = vpop.permute.xlu0 %961 }
0x1025   :  { %1393 = vmatmul.mubr.msk.bf16.vlgmr.msra.gmra.mrb[24].mxu0 %vm219_vm2, %v962_v6 }
0x1026   :  { %1113 = vmatpush1.bf16.msra.mxu0 %v1763_v19  ;;  %1144 = vmatprep.mubr.bf16.mxu0 %v1671_v21 }
0x1027   :  { %1114 = vmatprep.subr.bf16.mxu0 %v1768_v20 }
0x102a   :  { %1115 = vmatpush1.bf16.msra.mxu0 %v1776_v22 }
0x102b   :  { %1258 = vmatprep.subr.bf16.mxu0 %v1758_v18 }
0x102d   :  { %v890_v32 = vpop.permute.xlu1 %889 }
0x102e   :  { %1478 = vmatmul.mubr.msk.bf16.vlgmr.msra.gmra.mrb[20].mxu1 %vm219_vm2, %v890_v32 }
0x102f   :  { %1482 = vmatpush3.bf16.msra.mxu1 %v1805_v51  ;;  %1485 = vmatprep.mubr.msk.bf16.mxu1 %vm1675_vm3, %v1674_v52 }
0x1030   :  { %1483 = vmatprep.subr.bf16.mxu1 %v1674_v52 }
0x1033   :  { %1484 = vmatpush3.bf16.msra.mxu1 %v1814_v55 }
0x1034   :  { %1489 = vmatprep.subr.bf16.mxu1 %v1674_v52 }
0x10f8   :  { %v1000_v34 = vpop.f32.mrb[24].mxu0 }
0x10f9   :  { %v1080_v35 = vadd.f32 %v1000_v34, %v156_v33  ;;  %v1002_v18 = vpop.f32.mrb[25].mxu0 }
0x10fa   :  { %v1004_v36 = vpop.f32.mrb[26].mxu0 }
0x10fb   :  { %1605 = vtanh.f32 %v1080_v35  ;;  %v1005_v37 = vpop.f32.mrb[27].mxu0  ;;  %v1396_v4 = vmul.f32 -1.442695, %v1080_v35 }
0x1101   :  { %v928_v38 = vpop.f32.mrb[20].mxu1 }
0x1102   :  { %v1007_v39 = vadd.f32 %v1002_v18, %v928_v38  ;;  %v1479_v40 = vpop.f32.mrb[21].mxu1 }
0x1103   :  { %v931_v41 = vpop.f32.mrb[22].mxu1 }
0x1104   :  { %v1008_v42 = vadd.f32 %v1793_v29, %v1007_v39  ;;  %v1480_v43 = vpop.f32.mrb[23].mxu1 }
0x1105   :  { %v1606_v44 = vpop.eup %1605 }
0x1106   :  { %1607 = vtanh.f32 %v1008_v42  ;;  %1090 = vrot.lane.b32.xlu0 %v1606_v44, %s1670_s23  ;;  %v1394_v46 = vmul.f32 -1.442695, %v1008_v42 }
0x1107   :  { %1609 = vpow2.f32 %v1396_v4 }
0x1108   :  { %1611 = vpow2.f32 %v1394_v46 }
0x1110   :  { %v1608_v45 = vpop.eup %1607 }
0x1111   :  { %1018 = vrot.lane.b32.xlu1 %v1608_v45, %s1670_s23  ;;  %v1610_v47 = vpop.eup %1609 }
0x1112   :  { %v1084_v48 = vadd.f32 1.0, %v1610_v47  ;;  %v1612_v50 = vpop.eup %1611 }
0x1113   :  { %v1012_v49 = vadd.f32 1.0, %v1612_v50 }
0x1114   :  { %1613 = vrcp.f32 %v1084_v48 }
0x1115   :  { %1615 = vrcp.f32 %v1012_v49 }
0x111e   :  { %v1614_v53 = vpop.eup %1613 }
0x111f   :  { %v1616_v57 = vpop.eup %1615  ;;  %v1088_v10 = vmul.f32 %v1614_v53, %v1961_v15 }
0x1120   :  { %v1016_v62 = vmul.f32 %v1616_v57, %v1965_v23 }
0x1178   :  { %v1091_v54 = vpop.permute.xlu0 %1090 }
0x1179   :  { %v1093_v56 = vmul.f32 %v1614_v53, %v1091_v54 }
0x117b   :  { %1095 = vrot.lane.b32.xlu0 %v1093_v56, %s1673_s2 }
0x1183   :  { %v1019_v58 = vpop.permute.xlu1 %1018 }
0x1184   :  { %v1021_v59 = vmul.f32 %v1616_v57, %v1019_v58 }
0x1186   :  { %1023 = vrot.lane.b32.xlu1 %v1021_v59, %s1673_s2 }
0x11ed   :  { %v1096_v60 = vpop.permute.xlu0 %1095 }
0x11ee   :  { %v1993_v61 = vadd.f32 %v1096_v60, %v1088_v10 }
0x11f0   :  { %1617 = vtanh.f32 %v1993_v61 }
0x11f8   :  { %v1024_v63 = vpop.permute.xlu1 %1023 }
0x11f9   :  { %v1997_v0 = vadd.f32 %v1024_v63, %v1016_v62 }
0x11fa   :  { %v1618_v1 = vpop.eup %1617 }
0x11fb   :  { %1619 = vtanh.f32 %v1997_v0  ;;  %1101 = vrot.lane.b32.xlu0 %v1618_v1, %s1670_s23 }
0x1205   :  { %v1620_v2 = vpop.eup %1619 }
0x1206   :  { %1029 = vrot.lane.b32.xlu1 %v1620_v2, %s1670_s23 }
0x126d   :  { %v1102_v3 = vpop.permute.xlu0 %1101 }
0x126e   :  { %v1104_v11 = vmul.f32 %v1614_v53, %v1102_v3 }
0x1270   :  { %v1105_v7 = vpack.c.bf16 %v1104_v11, %v1104_v11 }
0x1272   :  { %1107 = vrot.lane.b32.xlu0 %v1105_v7, %s1673_s2 }
0x1278   :  { %v1030_v12 = vpop.permute.xlu1 %1029 }
0x1279   :  { %v1032_v13 = vmul.f32 %v1616_v57, %v1030_v12 }
0x127b   :  { %v1033_v14 = vpack.c.bf16 %v1032_v13, %v1032_v13  ;;  %v1403_v13 = vld [vmem:[%s2049_s6] ss:$0 sm:$0xff] }
0x127d   :  { %1035 = vrot.lane.b32.xlu1 %v1033_v14, %s1673_s2 }
0x12e4   :  { %v1108_v15 = vpop.permute.xlu0 %1107 }
0x12e5   :  { %1397 = vmatmul.mubr.msk.bf16.vlgmr.msra.gmra.mrb[28].mxu0 %vm219_vm2, %v1108_v15 }
0x12e6   :  { %1259 = vmatpush1.bf16.msra.mxu0 %v1763_v19  ;;  %1290 = vmatprep.mubr.bf16.mxu0 %v1671_v21  ;;  %v159_v19 = vadd.f32 %v1846_v8, %v1747_v5 }
0x12e7   :  { %1260 = vmatprep.subr.bf16.mxu0 %v1768_v20 }
0x12ea   :  { %1261 = vmatpush1.bf16.msra.mxu0 %v1776_v22 }
0x12ef   :  { %v1036_v16 = vpop.permute.xlu1 %1035 }
0x12f0   :  { %1486 = vmatmul.mubr.msk.bf16.vlgmr.msra.gmra.mrb[24].mxu1 %vm219_vm2, %v1036_v16 }
0x12f1   :  { %1490 = vmatpush3.bf16.msra.mxu1 %v1805_v51  ;;  %1493 = vmatprep.mubr.msk.bf16.mxu1 %vm1675_vm3, %v1674_v52 }
0x12f2   :  { %1491 = vmatprep.subr.bf16.mxu1 %v1674_v52 }
0x12f5   :  { %1492 = vmatpush3.bf16.msra.mxu1 %v1814_v55 }
0x13b8   :  { %v1146_v21 = vpop.f32.mrb[28].mxu0 }
0x13b9   :  { %v1226_v17 = vadd.f32 %v1146_v21, %v159_v19  ;;  %v1148_v20 = vpop.f32.mrb[29].mxu0 }
0x13ba   :  { %v1150_v23 = vpop.f32.mrb[30].mxu0 }
0x13bb   :  { %1621 = vtanh.f32 %v1226_v17  ;;  %v1151_v22 = vpop.f32.mrb[31].mxu0  ;;  %v1400_v5 = vmul.f32 -1.442695, %v1226_v17 }
0x13c3   :  { %v1074_v24 = vpop.f32.mrb[24].mxu1 }
0x13c4   :  { %v1153_v9 = vadd.f32 %v1148_v20, %v1074_v24  ;;  %v1487_v25 = vpop.f32.mrb[25].mxu1  ;;  %v1404_v24 = vld [vmem:[#allocation2] ss:$0 sm:$0xff] }
0x13c5   :  { %v1622_v51 = vpop.eup %1621  ;;  %v1077_v26 = vpop.f32.mrb[26].mxu1 }
0x13c6   :  { %v1154_v27 = vadd.f32 %v1793_v29, %v1153_v9  ;;  %1236 = vrot.lane.b32.xlu0 %v1622_v51, %s1670_s23  ;;  %v1488_v52 = vpop.f32.mrb[27].mxu1 }
0x13c8   :  { %1623 = vtanh.f32 %v1154_v27  ;;  %v1398_v8 = vmul.f32 -1.442695, %v1154_v27 }
0x13c9   :  { %1625 = vpow2.f32 %v1400_v5 }
0x13ca   :  { %1627 = vpow2.f32 %v1398_v8 }
0x13d2   :  { %v1624_v55 = vpop.eup %1623 }
0x13d3   :  { %1164 = vrot.lane.b32.xlu1 %v1624_v55, %s1670_s23  ;;  %v1626_v28 = vpop.eup %1625 }
0x13d4   :  { %v1230_v30 = vadd.f32 1.0, %v1626_v28  ;;  %v1628_v31 = vpop.eup %1627 }
0x13d5   :  { %v1158_v6 = vadd.f32 1.0, %v1628_v31 }
0x13d6   :  { %1629 = vrcp.f32 %v1230_v30 }
0x13d7   :  { %1631 = vrcp.f32 %v1158_v6 }
0x13e0   :  { %v1630_v32 = vpop.eup %1629 }
0x13e1   :  { %v1632_v35 = vpop.eup %1631  ;;  %v1234_v37 = vmul.f32 %v1630_v32, %v1993_v61 }
0x13e2   :  { %v1162_v40 = vmul.f32 %v1632_v35, %v1997_v0 }
0x1438   :  { %v1237_v33 = vpop.permute.xlu0 %1236 }
0x1439   :  { %v1239_v34 = vmul.f32 %v1630_v32, %v1237_v33 }
0x143b   :  { %1241 = vrot.lane.b32.xlu0 %v1239_v34, %s1673_s2 }
0x1445   :  { %v1165_v18 = vpop.permute.xlu1 %1164 }
0x1446   :  { %v1167_v36 = vmul.f32 %v1632_v35, %v1165_v18 }
0x1448   :  { %1169 = vrot.lane.b32.xlu1 %v1167_v36, %s1673_s2 }
0x14ad   :  { %v1242_v38 = vpop.permute.xlu0 %1241 }
0x14ae   :  { %v1244_v39 = vadd.f32 %v1242_v38, %v1234_v37 }
0x14b0   :  { %1633 = vtanh.f32 %v1244_v39 }
0x14ba   :  { %v1634_v41 = vpop.eup %1633  ;;  %v1170_v42 = vpop.permute.xlu1 %1169 }
0x14bb   :  { %v1172_v43 = vadd.f32 %v1170_v42, %v1162_v40  ;;  %1247 = vrot.lane.b32.xlu0 %v1634_v41, %s1670_s23 }
0x14bd   :  { %1635 = vtanh.f32 %v1172_v43 }
0x14c7   :  { %v1636_v44 = vpop.eup %1635 }
0x14c8   :  { %1175 = vrot.lane.b32.xlu1 %v1636_v44, %s1670_s23 }
0x152d   :  { %v1248_v45 = vpop.permute.xlu0 %1247 }
0x152e   :  { %v1250_v4 = vmul.f32 %v1630_v32, %v1248_v45 }
0x1530   :  { %v1251_v46 = vpack.c.bf16 %v1250_v4, %v1250_v4 }
0x1532   :  { %1253 = vrot.lane.b32.xlu0 %v1251_v46, %s1673_s2 }
0x153a   :  { %v1176_v47 = vpop.permute.xlu1 %1175 }
0x153b   :  { %v1178_v48 = vmul.f32 %v1632_v35, %v1176_v47 }
0x153d   :  { %v1179_v50 = vpack.c.bf16 %v1178_v48, %v1178_v48 }
0x153f   :  { %1181 = vrot.lane.b32.xlu1 %v1179_v50, %s1673_s2 }
0x15a4   :  { %v1254_v49 = vpop.permute.xlu0 %1253 }
0x15a5   :  { %1401 = vmatmul.mubr.msk.bf16.vlgmr.msra.gmra.mrb[32].mxu0 %vm219_vm2, %v1254_v49 }
0x15b1   :  { %v1182_v53 = vpop.permute.xlu1 %1181 }
0x15b2   :  { %1494 = vmatmul.mubr.msk.bf16.vlgmr.msra.gmra.mrb[28].mxu1 %vm219_vm2, %v1182_v53 }
0x1678   :  { %v1292_v54 = vpop.f32.mrb[32].mxu0 }
0x1679   :  { %v1293_v56 = vpop.f32.mrb[33].mxu0 }
0x167a   :  { %v1295_v57 = vpop.f32.mrb[34].mxu0 }
0x167b   :  { %v1296_v58 = vpop.f32.mrb[35].mxu0 }
0x1685   :  { %v1220_v59 = vpop.f32.mrb[28].mxu1 }
0x1686   :  { %v1298_v10 = vadd.f32 %v1293_v56, %v1220_v59  ;;  %v1495_v60 = vpop.f32.mrb[29].mxu1 }
0x1687   :  { %v1223_v61 = vpop.f32.mrb[30].mxu1 }
0x1688   :  { %v1299_v62 = vadd.f32 %v1793_v29, %v1298_v10  ;;  %v1496_v63 = vpop.f32.mrb[31].mxu1 }
0x168a   :  { %1637 = vtanh.f32 %v1299_v62  ;;  %v1402_v1 = vmul.f32 -1.442695, %v1299_v62 }
0x168c   :  { %1639 = vpow2.f32 %v1402_v1 }
0x1694   :  { %v1638_v0 = vpop.eup %1637 }
0x1695   :  { %1309 = vrot.lane.b32.xlu0 %v1638_v0, %s1670_s23 }
0x1696   :  { %v1640_v2 = vpop.eup %1639 }
0x1697   :  { %v1303_v3 = vadd.f32 1.0, %v1640_v2 }
0x1699   :  { %1641 = vrcp.f32 %v1303_v3 }
0x16a3   :  { %v1642_v11 = vpop.eup %1641 }
0x16a4   :  { %v1307_v29 = vmul.f32 %v1642_v11, %v1172_v43 }
0x1707   :  { %v1310_v7 = vpop.permute.xlu0 %1309 }
0x1708   :  { %v1312_v12 = vmul.f32 %v1642_v11, %v1310_v7 }
0x170a   :  { %1314 = vrot.lane.b32.xlu1 %v1312_v12, %s1673_s2 }
0x170e   :  { %1330 = vrot.lane.b32.xlu1 %v1403_v13, %s1672_s9 }
0x177c   :  { %v1315_v14 = vpop.permute.xlu1 %1314 }
0x177d   :  { %v1317_v15 = vadd.f32 %v1315_v14, %v1307_v29 }
0x177f   :  { %1643 = vtanh.f32 %v1317_v15 }
0x1780   :  { %v1331_v21 = vpop.permute.xlu1 %1330 }
0x1789   :  { %v1644_v16 = vpop.eup %1643 }
0x178a   :  { %1320 = vrot.lane.b32.xlu0 %v1644_v16, %s1670_s23 }
0x17fc   :  { %v1321_v19 = vpop.permute.xlu0 %1320 }
0x17fd   :  { %v1323_v17 = vmul.f32 %v1642_v11, %v1321_v19 }
0x17ff   :  { %v1333_v20 = vmul.f32 %v1331_v21, %v1323_v17 }
0x1801   :  { %1335 = vrot.lane.b32.xlu0 %v1333_v20, %s1673_s2 }
0x1873   :  { %v1336_v23 = vpop.permute.xlu0 %1335 }
0x1874   :  { %v1338_v22 = vsel %vm219_vm2, %v1336_v23, 0.0 }
0x1875   :  { %1339 = vadd.xlane.f32.xlu1 %v1338_v22 }
0x1902   :  { %v1340_v9 = vpop.xlane.xlu1 %1339 }
0x1903   :  { %v1348_v25 = vadd.f32 %v1404_v24, %v1340_v9 }
0x1905   :  { %1350 = vst.msk [vmem:[%s2051_s8] sm:$0xff] %vm1349_vm4, %v1348_v25 }
0x1906   :  { %1355 = vsyncpa [#allocation4], 1 }

</bundles_post_ra>
